<compile_context>
chip_gen: v7x
topology: tpu7x:2x2x1
jax: 0.10.0
libtpu: 0.0.40
codegen_flags: <defaults>
</compile_context>

<pallas_src>
import functools

import jax
import jax.numpy as jnp
from jax.experimental import pallas as pl
from jax.experimental.pallas import tpu as pltpu

BN_EPS = 1e-5


# ---------------------------------------------------------------------------
# Tiling / VMEM helpers
# ---------------------------------------------------------------------------
def _vmem_capacity():
    try:
        return int(pltpu.get_tpu_info().vmem_capacity_bytes)
    except Exception:
        return 64 * 1024 * 1024  # conservative (v7x per-TC)


def _divisor_tiles(m, quantum=128, cap=None):
    cap = m if cap is None else min(cap, m)
    return [t for t in range(quantum, cap + 1, quantum) if m % t == 0]


def _pick_lane_tile(m, per_lane_bytes, fixed_bytes, budget, cap):
    """Largest multiple-of-128 divisor of m whose per-step footprint fits."""
    cands = _divisor_tiles(m, 128, cap)
    if not cands:
        # TODO(synk): pad M to a multiple of 128 and mask the tail instead of the
        #             whole-M fallback (only hit for M not divisible by 128).
        return m
    for t in reversed(cands):
        if fixed_bytes + t * per_lane_bytes <= budget:
            return t
    return cands[0]


def _pick_ms_block(ms, cap=2048):
    cands = _divisor_tiles(ms, 128, min(cap, ms))
    return cands[-1] if cands else ms


def _vmem_limit(estimate_bytes, capacity):
    return int(min(int(capacity * 0.9),
                   max(32 * 1024 * 1024, 2 * estimate_bytes + (8 << 20))))


# ---------------------------------------------------------------------------
# Kernel 1: fused 1x1-conv projections (channel-major, lane-dense outputs).
#   a   = (w_cp_theta @ W_theta) x + b      (theta folded with concat_project)
#   phi = W_phi x + b_phi   (bf16 out),  g = W_g x + b_g   (bf16 out)
# ---------------------------------------------------------------------------
def _proj_kernel(x_ref, wt_ref, bt_ref, wp_ref, bp_ref, wg_ref, bg_ref,
                 a_ref, phi_ref, g_ref):
    xb = x_ref[0].astype(jnp.bfloat16)                       # (C, tm) bf16
    a_ref[0] = (jnp.dot(wt_ref[...], xb,
                        preferred_element_type=jnp.float32) + bt_ref[...])
    phi = (jnp.dot(wp_ref[...], xb,
                   preferred_element_type=jnp.float32) + bp_ref[...])
    g = (jnp.dot(wg_ref[...], xb,
                 preferred_element_type=jnp.float32) + bg_ref[...])
    phi_ref[0] = phi.astype(jnp.bfloat16)
    g_ref[0] = g.astype(jnp.bfloat16)


def _proj_call(x_cm, w_t, b_t, w_p, b_p, w_g, b_g, tm, vmem_limit):
    b, c, m = x_cm.shape
    inter = w_p.shape[0]
    n_m = m // tm
    return pl.pallas_call(
        _proj_kernel,
        grid=(b, n_m),
        in_specs=[
            pl.BlockSpec((1, c, tm), lambda ib, im: (ib, 0, im)),
            pl.BlockSpec((1, c), lambda ib, im: (0, 0)),
            pl.BlockSpec((1, 1), lambda ib, im: (0, 0)),
            pl.BlockSpec((inter, c), lambda ib, im: (0, 0)),
            pl.BlockSpec((inter, 1), lambda ib, im: (0, 0)),
            pl.BlockSpec((inter, c), lambda ib, im: (0, 0)),
            pl.BlockSpec((inter, 1), lambda ib, im: (0, 0)),
        ],
        out_specs=(
            pl.BlockSpec((1, 1, tm), lambda ib, im: (ib, 0, im)),
            pl.BlockSpec((1, inter, tm), lambda ib, im: (ib, 0, im)),
            pl.BlockSpec((1, inter, tm), lambda ib, im: (ib, 0, im)),
        ),
        out_shape=(
            jax.ShapeDtypeStruct((b, 1, m), jnp.float32),
            jax.ShapeDtypeStruct((b, inter, m), jnp.bfloat16),
            jax.ShapeDtypeStruct((b, inter, m), jnp.bfloat16),
        ),
        compiler_params=pltpu.CompilerParams(
            dimension_semantics=("parallel", "parallel"),
            vmem_limit_bytes=vmem_limit),
    )(x_cm, w_t, b_t, w_p, b_p, w_g, b_g)


# ---------------------------------------------------------------------------
# Kernel 2: pairwise map + aggregation + W projection + BN partial stats,
# with the Ms axis tiled as a reduction grid axis ("arbitrary").
#   f^T[j,i] = relu(c[j] + a[i]) / Ms      (never written to HBM, bf16 into MXU)
#   acc     += g_blk (bf16) @ f^T_blk (bf16)             (inter, tm) f32 scratch
#   finalize: W_y^T = W_W @ acc + b_W   (C, tm) lane-dense, plus per-tile sums.
# ---------------------------------------------------------------------------
def _attend_kernel(a_ref, c_ref, g_ref, ww_ref, bw_ref,
                   wy_ref, sum_ref, sq_ref, acc_ref, *, inv_n):
    ims = pl.program_id(2)

    @pl.when(ims == 0)
    def _():
        acc_ref[...] = jnp.zeros_like(acc_ref)

    a = a_ref[0]                                             # (1, tm) f32
    cc = c_ref[0]                                            # (ms_blk, 1) f32
    f_t = (jnp.maximum(cc + a, 0.0) * inv_n).astype(jnp.bfloat16)
    acc_ref[...] += jnp.dot(g_ref[0], f_t,
                            preferred_element_type=jnp.float32)

    @pl.when(ims == pl.num_programs(2) - 1)
    def _():
        wy = (jnp.dot(ww_ref[...], acc_ref[...].astype(jnp.bfloat16),
                      preferred_element_type=jnp.float32) + bw_ref[...])
        wy_ref[0] = wy
        # NOTE: E[x^2]-E[x]^2 combine in f32 (fine for BN-scale activations).
        sum_ref[0, 0] = jnp.sum(wy, axis=1, keepdims=True)   # (C, 1)
        sq_ref[0, 0] = jnp.sum(wy * wy, axis=1, keepdims=True)


def _attend_call(a, c, g_s, w_w, b_w, tm, ms_blk, vmem_limit):
    b, _, m = a.shape
    ms = c.shape[1]
    inter = g_s.shape[1]
    cch = w_w.shape[0]
    n_m = m // tm
    n_ms = ms // ms_blk
    kern = functools.partial(_attend_kernel, inv_n=1.0 / ms)
    return pl.pallas_call(
        kern,
        grid=(b, n_m, n_ms),
        in_specs=[
            pl.BlockSpec((1, 1, tm), lambda ib, im, ims: (ib, 0, im)),       # a
            pl.BlockSpec((1, ms_blk, 1), lambda ib, im, ims: (ib, ims, 0)),  # c
            pl.BlockSpec((1, inter, ms_blk), lambda ib, im, ims: (ib, 0, ims)),  # g^T
            pl.BlockSpec((cch, inter), lambda ib, im, ims: (0, 0)),          # W_W
            pl.BlockSpec((cch, 1), lambda ib, im, ims: (0, 0)),              # b_W
        ],
        out_specs=(
            pl.BlockSpec((1, cch, tm), lambda ib, im, ims: (ib, 0, im)),     # W_y^T
            pl.BlockSpec((1, 1, cch, 1), lambda ib, im, ims: (ib, im, 0, 0)),
            pl.BlockSpec((1, 1, cch, 1), lambda ib, im, ims: (ib, im, 0, 0)),
        ),
        out_shape=(
            jax.ShapeDtypeStruct((b, cch, m), jnp.float32),
            jax.ShapeDtypeStruct((b, n_m, cch, 1), jnp.float32),
            jax.ShapeDtypeStruct((b, n_m, cch, 1), jnp.float32),
        ),
        scratch_shapes=[pltpu.VMEM((inter, tm), jnp.float32)],
        compiler_params=pltpu.CompilerParams(
            dimension_semantics=("parallel", "parallel", "arbitrary"),
            vmem_limit_bytes=vmem_limit),
    )(a, c, g_s, w_w, b_w)


# ---------------------------------------------------------------------------
# Kernel 3: folded BatchNorm affine + residual add (pure HBM-bound).
# ---------------------------------------------------------------------------
def _bn_residual_kernel(wy_ref, x_ref, scale_ref, shift_ref, z_ref):
    z_ref[0] = wy_ref[0] * scale_ref[...] + shift_ref[...] + x_ref[0]


def _bn_residual_call(wy, x_cm, scale, shift, tm, vmem_limit):
    b, cch, m = wy.shape
    n_m = m // tm
    return pl.pallas_call(
        _bn_residual_kernel,
        grid=(b, n_m),
        in_specs=[
            pl.BlockSpec((1, cch, tm), lambda ib, im: (ib, 0, im)),
            pl.BlockSpec((1, cch, tm), lambda ib, im: (ib, 0, im)),
            pl.BlockSpec((cch, 1), lambda ib, im: (0, 0)),
            pl.BlockSpec((cch, 1), lambda ib, im: (0, 0)),
        ],
        out_specs=pl.BlockSpec((1, cch, tm), lambda ib, im: (ib, 0, im)),
        out_shape=jax.ShapeDtypeStruct((b, cch, m), jnp.float32),
        input_output_aliases={0: 0},     # reuse the W_y HBM buffer for z
        compiler_params=pltpu.CompilerParams(
            dimension_semantics=("parallel", "parallel"),
            vmem_limit_bytes=vmem_limit),
    )(wy, x_cm, scale, shift)


# ---------------------------------------------------------------------------
# Per-kernel tile / VMEM-estimate policies
# ---------------------------------------------------------------------------
def _proj_tiles(m, cch, inter, budget):
    per_lane = cch * 10 + inter * 16 + 24          # x f32 (x2) + bf16 cast + outs
    tm = _pick_lane_tile(m, per_lane, 1 << 20, budget, cap=2048)
    return tm, (1 << 20) + tm * per_lane


def _attend_tiles(m, ms, cch, inter, budget):
    ms_blk = _pick_ms_block(ms)
    fixed = (ms_blk * 128 * 4 * 2                  # c block (last-dim-1, padded), x2
             + inter * ms_blk * 2 * 2              # g block bf16, x2
             + cch * inter * 2 + cch * 8           # W_W bf16 + b_W
             + (1 << 20))                          # stats buffers / mosaic temps
    per_lane = ms_blk * 6 + inter * 6 + cch * 12 + 16
    tm = _pick_lane_tile(m, per_lane, fixed, budget, cap=2048)
    return tm, ms_blk, fixed + tm * per_lane


def _bnres_tiles(m, cch, budget):
    per_lane = cch * 28
    tm = _pick_lane_tile(m, per_lane, 1 << 20, budget, cap=8192)
    return tm, (1 << 20) + tm * per_lane


# ---------------------------------------------------------------------------
# Full forward (== _NonLocalBlockND.forward with default constructor args).
# ---------------------------------------------------------------------------
@jax.jit
def nonlocal_block_forward(x, params):
    """x: (b, C, T, H, W) float32 -> z: same shape."""
    b, cch, t, h, w = x.shape
    # TODO(synk): PyTorch MaxPool3d((1,2,2)) floors odd H/W; we require even.
    assert h % 2 == 0 and w % 2 == 0, "sub_sample MaxPool3d((1,2,2)) needs even H, W"
    inter = params["w_theta"].shape[0]
    m = t * h * w
    ms = t * (h // 2) * (w // 2)
    cap = _vmem_capacity()
    budget = cap // 3

    x_cm = x.reshape(b, cch, m).astype(jnp.float32)

    # Fold concat_project's theta-half into the theta 1x1 conv.
    w_cp = params["w_cp"]
    w_theta_eff = (w_cp[:inter] @ params["w_theta"]).reshape(1, cch)
    b_theta_eff = (w_cp[:inter] @ params["b_theta"]).reshape(1, 1)

    tm_p, est_p = _proj_tiles(m, cch, inter, budget)
    a, phi, g = _proj_call(
        x_cm,
        w_theta_eff.astype(jnp.bfloat16), b_theta_eff.astype(jnp.float32),
        params["w_phi"].astype(jnp.bfloat16),
        params["b_phi"].reshape(inter, 1).astype(jnp.float32),
        params["w_g"].astype(jnp.bfloat16),
        params["b_g"].reshape(inter, 1).astype(jnp.float32),
        tm_p, _vmem_limit(est_p, cap))

    # MaxPool3d((1,2,2)) on the small (b, inter, T, H, W) intermediates (glue).
    def pool(v):
        return (v.reshape(b, inter, t, h // 2, 2, w // 2, 2)
                 .max(axis=(4, 6)).reshape(b, inter, ms))
    phi_s = pool(phi)                                   # (b, i, Ms) bf16
    g_s = pool(g)                                       # (b, i, Ms) bf16 (MXU feed)

    # concat_project's phi-half, applied AFTER pooling (as in the Sequential).
    c = jnp.einsum('i,bim->bm', w_cp[inter:], phi_s.astype(jnp.float32))
    c = c.reshape(b, ms, 1)

    tm_a, ms_blk, est_a = _attend_tiles(m, ms, cch, inter, budget)
    wy, sums, sqs = _attend_call(
        a, c, g_s,
        params["w_W"].astype(jnp.bfloat16),
        params["b_W"].reshape(cch, 1).astype(jnp.float32),
        tm_a, ms_blk, _vmem_limit(est_a, cap))

    # BatchNorm3d(C): training-mode batch statistics over (b, T, H, W).
    cnt = b * m
    s1 = jnp.sum(sums, axis=(0, 1))[:, 0]
    s2 = jnp.sum(sqs, axis=(0, 1))[:, 0]
    mean = s1 / cnt
    var = jnp.maximum(s2 / cnt - mean * mean, 0.0)
    inv = jax.lax.rsqrt(var + BN_EPS)
    scale = (params["bn_gamma"] * inv).reshape(cch, 1)
    shift = (params["bn_beta"] - mean * params["bn_gamma"] * inv).reshape(cch, 1)

    tm_r, est_r = _bnres_tiles(m, cch, budget)
    z = _bn_residual_call(wy, x_cm, scale.astype(jnp.float32),
                          shift.astype(jnp.float32), tm_r,
                          _vmem_limit(est_r, cap))
    return z.reshape(b, cch, t, h, w)


# ---------------------------------------------------------------------------
# Parameters (shapes match the PyTorch submodules) + pure-JAX reference.
# ---------------------------------------------------------------------------
def init_params(key, in_channels, *, zero_bn=True):
    inter = max(in_channels // 2, 1)
    ks = jax.random.split(key, 11)

    def u(k, shape, fan_in):
        bd = 1.0 / float(fan_in) ** 0.5
        return jax.random.uniform(k, shape, jnp.float32, -bd, bd)

    return {
        "w_g":     u(ks[0], (inter, in_channels), in_channels),
        "b_g":     u(ks[1], (inter,), in_channels),
        "w_theta": u(ks[2], (inter, in_channels), in_channels),
        "b_theta": u(ks[3], (inter,), in_channels),
        "w_phi":   u(ks[4], (inter, in_channels), in_channels),
        "b_phi":   u(ks[5], (inter,), in_channels),
        "w_cp":    u(ks[6], (2 * inter,), 2 * inter),             # no bias
        "w_W":     u(ks[7], (in_channels, inter), inter),
        "b_W":     u(ks[8], (in_channels,), inter),
        # W[1] BatchNorm3d: PyTorch init is constant_(weight, 0), constant_(bias, 0)
        "bn_gamma": (jnp.zeros((in_channels,), jnp.float32) if zero_bn
                     else 1.0 + 0.5 * jax.random.normal(ks[9], (in_channels,), jnp.float32)),
        "bn_beta":  (jnp.zeros((in_channels,), jnp.float32) if zero_bn
                     else 0.1 * jax.random.normal(ks[10], (in_channels,), jnp.float32)),
    }


def reference_forward(x, params, *, bf16_matmuls=False):
    """Plain-JAX mirror of the PyTorch forward.  Returns (z, bn_scale_per_channel).
    With bf16_matmuls=True the matmul operands are rounded to bf16 (f32 accumulate)
    to mirror the kernel's mixed-precision policy."""
    b, cch, t, h, w = x.shape
    inter = params["w_theta"].shape[0]
    m = t * h * w
    xf = x.reshape(b, cch, m)
    mm_dt = jnp.bfloat16 if bf16_matmuls else jnp.float32
    store_dt = jnp.bfloat16 if bf16_matmuls else jnp.float32

    def mm(eq, lhs, rhs):
        return jnp.einsum(eq, lhs.astype(mm_dt), rhs.astype(mm_dt),
                          preferred_element_type=jnp.float32)

    def conv1x1(wt, bias, v):
        return mm('oc,bcm->bom', wt, v) + bias[None, :, None]

    def pool(v):
        return (v.reshape(b, inter, t, h // 2, 2, w // 2, 2)
                 .max(axis=(4, 6)).reshape(b, inter, -1))

    g_conv = conv1x1(params["w_g"], params["b_g"], xf).astype(store_dt)
    phi_conv = conv1x1(params["w_phi"], params["b_phi"], xf).astype(store_dt)
    g_x = jnp.transpose(pool(g_conv), (0, 2, 1))                      # (b, Ms, i)
    theta_x = conv1x1(params["w_theta"], params["b_theta"], xf)       # (b, i, M)
    phi_x = pool(phi_conv).astype(jnp.float32)                        # (b, i, Ms)

    ms = phi_x.shape[-1]
    theta_e = jnp.broadcast_to(theta_x[:, :, :, None], (b, inter, m, ms))
    phi_e = jnp.broadcast_to(phi_x[:, :, None, :], (b, inter, m, ms))
    concat = jnp.concatenate([theta_e, phi_e], axis=1)
    f = jax.nn.relu(jnp.einsum('c,bcms->bms', params["w_cp"], concat))
    f_div_c = f / ms
    y = mm('bms,bsi->bim', f_div_c, g_x)                              # (b, i, M)
    wy = mm('oi,bim->bom', params["w_W"], y) + params["b_W"][None, :, None]
    mean = wy.mean(axis=(0, 2))
    var = ((wy - mean[None, :, None]) ** 2).mean(axis=(0, 2))
    inv = jax.lax.rsqrt(var + BN_EPS)
    wy_bn = ((wy - mean[None, :, None]) * inv[None, :, None]
             * params["bn_gamma"][None, :, None] + params["bn_beta"][None, :, None])
    scale = params["bn_gamma"] * inv
    return (wy_bn + xf).reshape(b, cch, t, h, w), scale


if __name__ == "__main__":
    key = jax.random.PRNGKey(0)
    k_x, k_p1, k_p2 = jax.random.split(key, 3)

    in_channels, t, h, w = 8, 4, 16, 16
    x = jax.random.normal(k_x, (2, in_channels, t, h, w), jnp.float32)

    # 1) PyTorch-faithful init (BN weight/bias = 0): the block must be an exact
    #    identity, independent of matmul precision.
    params0 = init_params(k_p1, in_channels, zero_bn=True)
    z0 = jax.block_until_ready(nonlocal_block_forward(x, params0))
    assert z0.shape == x.shape, z0.shape
    assert bool(jnp.all(jnp.isfinite(z0)))
    assert jnp.allclose(z0, x, atol=1e-5), "zero-init BN must make the block identity"

    # 2) Non-trivial BN affine.  Tolerances are expressed in pre-BN units and
    #    propagated through the per-channel BN gain (gamma / batch-std), because
    #    BN with batch statistics amplifies tiny pre-BN differences on
    #    near-constant channels.
    params1 = init_params(k_p2, in_channels, zero_bn=False)
    z1 = jax.block_until_ready(nonlocal_block_forward(x, params1))
    assert bool(jnp.all(jnp.isfinite(z1)))

    ref_bf16, scale_b = reference_forward(x, params1, bf16_matmuls=True)
    ref_f32, scale_f = reference_forward(x, params1, bf16_matmuls=False)

    gain_b = jnp.abs(scale_b)[None, :, None, None, None]
    gain_f = jnp.abs(scale_f)[None, :, None, None, None]
    err_b = jnp.abs(z1 - ref_bf16)
    err_f = jnp.abs(z1 - ref_f32)
    # Kernel logic check vs. a reference with the same bf16-operand policy.
    assert bool(jnp.all(err_b <= 2e-2 * gain_b + 2e-2)), float(jnp.max(err_b))
    # Drift vs. the pure-f32 reference: dominated by the bf16 matmul policy.
    assert bool(jnp.all(err_f <= 5e-2 * gain_f + 5e-2)), float(jnp.max(err_f))

    print("KERNEL_OK")
</pallas_src>

<mosaic_0001>
module attributes {stable_mosaic.version = 11 : i64} {
  func.func @_proj_kernel(%arg0: i32, %arg1: i32, %arg2: memref<1x8x1024xf32, #tpu.memory_space<vmem>>, %arg3: memref<1x8xbf16, #tpu.memory_space<vmem>>, %arg4: memref<1x1xf32, #tpu.memory_space<vmem>>, %arg5: memref<4x8xbf16, #tpu.memory_space<vmem>>, %arg6: memref<4x1xf32, #tpu.memory_space<vmem>>, %arg7: memref<4x8xbf16, #tpu.memory_space<vmem>>, %arg8: memref<4x1xf32, #tpu.memory_space<vmem>>, %arg9: memref<1x1x1024xf32, #tpu.memory_space<vmem>>, %arg10: memref<1x4x1024xbf16, #tpu.memory_space<vmem>>, %arg11: memref<1x4x1024xbf16, #tpu.memory_space<vmem>>) attributes {dimension_semantics = [#tpu.dimension_semantics<parallel>, #tpu.dimension_semantics<parallel>], iteration_bounds = array<i64: 2, 1>, scalar_prefetch = 0 : i64, scratch_operands = 0 : i64, tpu.core_type = #tpu.core_type<tc>, window_params = [{transform_indices = @transform_0, window_bounds = array<i64: 1, 8, 1024>}, {pipeline_mode = #tpu.pipeline_mode<synchronous>, transform_indices = @transform_1, window_bounds = array<i64: 1, 8>}, {pipeline_mode = #tpu.pipeline_mode<synchronous>, transform_indices = @transform_2, window_bounds = array<i64: 1, 1>}, {pipeline_mode = #tpu.pipeline_mode<synchronous>, transform_indices = @transform_3, window_bounds = array<i64: 4, 8>}, {pipeline_mode = #tpu.pipeline_mode<synchronous>, transform_indices = @transform_4, window_bounds = array<i64: 4, 1>}, {pipeline_mode = #tpu.pipeline_mode<synchronous>, transform_indices = @transform_5, window_bounds = array<i64: 4, 8>}, {pipeline_mode = #tpu.pipeline_mode<synchronous>, transform_indices = @transform_6, window_bounds = array<i64: 4, 1>}, {transform_indices = @transform_7, window_bounds = array<i64: 1, 1, 1024>}, {transform_indices = @transform_8, window_bounds = array<i64: 1, 4, 1024>}, {transform_indices = @transform_9, window_bounds = array<i64: 1, 4, 1024>}]} {
    %c0 = arith.constant 0 : index
    %c0_0 = arith.constant 0 : index
    %c0_1 = arith.constant 0 : index
    %0 = vector.load %arg2[%c0, %c0_0, %c0_1] : memref<1x8x1024xf32, #tpu.memory_space<vmem>>, vector<1x8x1024xf32>
    %1 = vector.shape_cast %0 : vector<1x8x1024xf32> to vector<8x1024xf32>
    %2 = arith.truncf %1 : vector<8x1024xf32> to vector<8x1024xbf16>
    %c0_2 = arith.constant 0 : index
    %c0_3 = arith.constant 0 : index
    %3 = vector.load %arg3[%c0_2, %c0_3] : memref<1x8xbf16, #tpu.memory_space<vmem>>, vector<1x8xbf16>
    %cst = arith.constant dense<0.000000e+00> : vector<1x1024xf32>
    %4 = tpu.matmul %3, %2, %cst {dimension_numbers = #tpu.dot_dimension_numbers<[1], [0], [0], [1], [0, 0, 1, 1], [], []>} : vector<1x8xbf16>, vector<8x1024xbf16>, vector<1x1024xf32> -> vector<1x1024xf32>
    %c0_4 = arith.constant 0 : index
    %c0_5 = arith.constant 0 : index
    %5 = vector.load %arg4[%c0_4, %c0_5] : memref<1x1xf32, #tpu.memory_space<vmem>>, vector<1x1xf32>
    %6 = vector.broadcast %5 : vector<1x1xf32> to vector<1x1024xf32>
    %7 = arith.addf %4, %6 : vector<1x1024xf32>
    %c0_6 = arith.constant 0 : index
    %c0_7 = arith.constant 0 : index
    %c0_8 = arith.constant 0 : index
    %8 = vector.load %arg9[%c0_6, %c0_7, %c0_8] : memref<1x1x1024xf32, #tpu.memory_space<vmem>>, vector<1x1x1024xf32>
    %9 = vector.shape_cast %8 : vector<1x1x1024xf32> to vector<1x1024xf32>
    %10 = vector.shape_cast %7 : vector<1x1024xf32> to vector<1x1x1024xf32>
    tpu.vector_store %arg9[%c0_6, %c0_7, %c0_8], %10 {strides = array<i32>} : memref<1x1x1024xf32, #tpu.memory_space<vmem>>, vector<1x1x1024xf32>,
    %c0_9 = arith.constant 0 : index
    %c0_10 = arith.constant 0 : index
    %11 = vector.load %arg5[%c0_9, %c0_10] : memref<4x8xbf16, #tpu.memory_space<vmem>>, vector<4x8xbf16>
    %cst_11 = arith.constant dense<0.000000e+00> : vector<4x1024xf32>
    %12 = tpu.matmul %11, %2, %cst_11 {dimension_numbers = #tpu.dot_dimension_numbers<[1], [0], [0], [1], [0, 0, 1, 1], [], []>} : vector<4x8xbf16>, vector<8x1024xbf16>, vector<4x1024xf32> -> vector<4x1024xf32>
    %c0_12 = arith.constant 0 : index
    %c0_13 = arith.constant 0 : index
    %13 = vector.load %arg6[%c0_12, %c0_13] : memref<4x1xf32, #tpu.memory_space<vmem>>, vector<4x1xf32>
    %14 = vector.broadcast %13 : vector<4x1xf32> to vector<4x1024xf32>
    %15 = arith.addf %12, %14 : vector<4x1024xf32>
    %c0_14 = arith.constant 0 : index
    %c0_15 = arith.constant 0 : index
    %16 = vector.load %arg7[%c0_14, %c0_15] : memref<4x8xbf16, #tpu.memory_space<vmem>>, vector<4x8xbf16>
    %cst_16 = arith.constant dense<0.000000e+00> : vector<4x1024xf32>
    %17 = tpu.matmul %16, %2, %cst_16 {dimension_numbers = #tpu.dot_dimension_numbers<[1], [0], [0], [1], [0, 0, 1, 1], [], []>} : vector<4x8xbf16>, vector<8x1024xbf16>, vector<4x1024xf32> -> vector<4x1024xf32>
    %c0_17 = arith.constant 0 : index
    %c0_18 = arith.constant 0 : index
    %18 = vector.load %arg8[%c0_17, %c0_18] : memref<4x1xf32, #tpu.memory_space<vmem>>, vector<4x1xf32>
    %19 = vector.broadcast %18 : vector<4x1xf32> to vector<4x1024xf32>
    %20 = arith.addf %17, %19 : vector<4x1024xf32>
    %21 = arith.truncf %15 : vector<4x1024xf32> to vector<4x1024xbf16>
    %c0_19 = arith.constant 0 : index
    %c0_20 = arith.constant 0 : index
    %c0_21 = arith.constant 0 : index
    %22 = vector.load %arg10[%c0_19, %c0_20, %c0_21] : memref<1x4x1024xbf16, #tpu.memory_space<vmem>>, vector<1x4x1024xbf16>
    %23 = vector.shape_cast %22 : vector<1x4x1024xbf16> to vector<4x1024xbf16>
    %24 = vector.shape_cast %21 : vector<4x1024xbf16> to vector<1x4x1024xbf16>
    tpu.vector_store %arg10[%c0_19, %c0_20, %c0_21], %24 {strides = array<i32>} : memref<1x4x1024xbf16, #tpu.memory_space<vmem>>, vector<1x4x1024xbf16>,
    %25 = arith.truncf %20 : vector<4x1024xf32> to vector<4x1024xbf16>
    %c0_22 = arith.constant 0 : index
    %c0_23 = arith.constant 0 : index
    %c0_24 = arith.constant 0 : index
    %26 = vector.load %arg11[%c0_22, %c0_23, %c0_24] : memref<1x4x1024xbf16, #tpu.memory_space<vmem>>, vector<1x4x1024xbf16>
    %27 = vector.shape_cast %26 : vector<1x4x1024xbf16> to vector<4x1024xbf16>
    %28 = vector.shape_cast %25 : vector<4x1024xbf16> to vector<1x4x1024xbf16>
    tpu.vector_store %arg11[%c0_22, %c0_23, %c0_24], %28 {strides = array<i32>} : memref<1x4x1024xbf16, #tpu.memory_space<vmem>>, vector<1x4x1024xbf16>,
    return
  }
  func.func @transform_0(%arg0: i32, %arg1: i32) -> (i32, i32, i32) {
    %c0_i32 = arith.constant 0 : i32
    %c0_i32_0 = arith.constant 0 : i32
    return %arg0, %c0_i32, %arg1 : i32, i32, i32
  }
  func.func @transform_1(%arg0: i32, %arg1: i32) -> (i32, i32) {
    %c0_i32 = arith.constant 0 : i32
    %c0_i32_0 = arith.constant 0 : i32
    %c0_i32_1 = arith.constant 0 : i32
    return %c0_i32, %c0_i32_0 : i32, i32
  }
  func.func @transform_2(%arg0: i32, %arg1: i32) -> (i32, i32) {
    %c0_i32 = arith.constant 0 : i32
    %c0_i32_0 = arith.constant 0 : i32
    %c0_i32_1 = arith.constant 0 : i32
    return %c0_i32, %c0_i32_0 : i32, i32
  }
  func.func @transform_3(%arg0: i32, %arg1: i32) -> (i32, i32) {
    %c0_i32 = arith.constant 0 : i32
    %c0_i32_0 = arith.constant 0 : i32
    %c0_i32_1 = arith.constant 0 : i32
    return %c0_i32, %c0_i32_0 : i32, i32
  }
  func.func @transform_4(%arg0: i32, %arg1: i32) -> (i32, i32) {
    %c0_i32 = arith.constant 0 : i32
    %c0_i32_0 = arith.constant 0 : i32
    %c0_i32_1 = arith.constant 0 : i32
    return %c0_i32, %c0_i32_0 : i32, i32
  }
  func.func @transform_5(%arg0: i32, %arg1: i32) -> (i32, i32) {
    %c0_i32 = arith.constant 0 : i32
    %c0_i32_0 = arith.constant 0 : i32
    %c0_i32_1 = arith.constant 0 : i32
    return %c0_i32, %c0_i32_0 : i32, i32
  }
  func.func @transform_6(%arg0: i32, %arg1: i32) -> (i32, i32) {
    %c0_i32 = arith.constant 0 : i32
    %c0_i32_0 = arith.constant 0 : i32
    %c0_i32_1 = arith.constant 0 : i32
    return %c0_i32, %c0_i32_0 : i32, i32
  }
  func.func @transform_7(%arg0: i32, %arg1: i32) -> (i32, i32, i32) {
    %c0_i32 = arith.constant 0 : i32
    %c0_i32_0 = arith.constant 0 : i32
    return %arg0, %c0_i32, %arg1 : i32, i32, i32
  }
  func.func @transform_8(%arg0: i32, %arg1: i32) -> (i32, i32, i32) {
    %c0_i32 = arith.constant 0 : i32
    %c0_i32_0 = arith.constant 0 : i32
    return %arg0, %c0_i32, %arg1 : i32, i32, i32
  }
  func.func @transform_9(%arg0: i32, %arg1: i32) -> (i32, i32, i32) {
    %c0_i32 = arith.constant 0 : i32
    %c0_i32_0 = arith.constant 0 : i32
    return %arg0, %c0_i32, %arg1 : i32, i32, i32
  }
}

module attributes {stable_mosaic.version = 11 : i64} {
  func.func @_attend_kernel(%arg0: i32, %arg1: i32, %arg2: i32, %arg3: memref<1x1x1024xf32, #tpu.memory_space<vmem>>, %arg4: memref<1x256x1xf32, #tpu.memory_space<vmem>>, %arg5: memref<1x4x256xbf16, #tpu.memory_space<vmem>>, %arg6: memref<8x4xbf16, #tpu.memory_space<vmem>>, %arg7: memref<8x1xf32, #tpu.memory_space<vmem>>, %arg8: memref<1x8x1024xf32, #tpu.memory_space<vmem>>, %arg9: memref<1x1x8x1xf32, #tpu.memory_space<vmem>>, %arg10: memref<1x1x8x1xf32, #tpu.memory_space<vmem>>, %arg11: memref<4x1024xf32, #tpu.memory_space<vmem>>) attributes {dimension_semantics = [#tpu.dimension_semantics<parallel>, #tpu.dimension_semantics<parallel>, #tpu.dimension_semantics<arbitrary>], iteration_bounds = array<i64: 2, 1, 1>, scalar_prefetch = 0 : i64, scratch_operands = 1 : i64, tpu.core_type = #tpu.core_type<tc>, window_params = [{transform_indices = @transform_0, window_bounds = array<i64: 1, 1, 1024>}, {transform_indices = @transform_1, window_bounds = array<i64: 1, 256, 1>}, {transform_indices = @transform_2, window_bounds = array<i64: 1, 4, 256>}, {pipeline_mode = #tpu.pipeline_mode<synchronous>, transform_indices = @transform_3, window_bounds = array<i64: 8, 4>}, {pipeline_mode = #tpu.pipeline_mode<synchronous>, transform_indices = @transform_4, window_bounds = array<i64: 8, 1>}, {transform_indices = @transform_5, window_bounds = array<i64: 1, 8, 1024>}, {transform_indices = @transform_6, window_bounds = array<i64: 1, 1, 8, 1>}, {transform_indices = @transform_7, window_bounds = array<i64: 1, 1, 8, 1>}]} {
    %c0_i32 = arith.constant 0 : i32
    %0 = arith.cmpi eq, %arg2, %c0_i32 : i32
    %1 = arith.extui %0 : i1 to i32
    %c0_i32_0 = arith.constant 0 : i32
    %2 = arith.cmpi ne, %1, %c0_i32_0 : i32
    scf.if %2 {
      %cst_17 = arith.constant 0.000000e+00 : f32
      %24 = vector.broadcast %cst_17 : f32 to vector<4x1024xf32>
      %c0_18 = arith.constant 0 : index
      %c0_19 = arith.constant 0 : index
      %25 = vector.load %arg11[%c0_18, %c0_19] : memref<4x1024xf32, #tpu.memory_space<vmem>>, vector<4x1024xf32>
      tpu.vector_store %arg11[%c0_18, %c0_19], %24 {strides = array<i32>} : memref<4x1024xf32, #tpu.memory_space<vmem>>, vector<4x1024xf32>,
    } else {
    }
    %c0 = arith.constant 0 : index
    %c0_1 = arith.constant 0 : index
    %c0_2 = arith.constant 0 : index
    %3 = vector.load %arg3[%c0, %c0_1, %c0_2] : memref<1x1x1024xf32, #tpu.memory_space<vmem>>, vector<1x1x1024xf32>
    %4 = vector.shape_cast %3 : vector<1x1x1024xf32> to vector<1x1024xf32>
    %c0_3 = arith.constant 0 : index
    %c0_4 = arith.constant 0 : index
    %c0_5 = arith.constant 0 : index
    %5 = vector.load %arg4[%c0_3, %c0_4, %c0_5] : memref<1x256x1xf32, #tpu.memory_space<vmem>>, vector<1x256x1xf32>
    %6 = vector.shape_cast %5 : vector<1x256x1xf32> to vector<256x1xf32>
    %7 = vector.broadcast %6 : vector<256x1xf32> to vector<256x1024xf32>
    %8 = vector.broadcast %4 : vector<1x1024xf32> to vector<256x1024xf32>
    %9 = arith.addf %7, %8 : vector<256x1024xf32>
    %cst = arith.constant 0.000000e+00 : f32
    %10 = vector.broadcast %cst : f32 to vector<256x1024xf32>
    %11 = arith.maximumf %9, %10 : vector<256x1024xf32>
    %cst_6 = arith.constant 3.906250e-03 : f32
    %12 = vector.broadcast %cst_6 : f32 to vector<256x1024xf32>
    %13 = arith.mulf %11, %12 : vector<256x1024xf32>
    %14 = arith.truncf %13 : vector<256x1024xf32> to vector<256x1024xbf16>
    %c0_7 = arith.constant 0 : index
    %c0_8 = arith.constant 0 : index
    %15 = vector.load %arg11[%c0_7, %c0_8] : memref<4x1024xf32, #tpu.memory_space<vmem>>, vector<4x1024xf32>
    %c0_9 = arith.constant 0 : index
    %c0_10 = arith.constant 0 : index
    %c0_11 = arith.constant 0 : index
    %16 = vector.load %arg5[%c0_9, %c0_10, %c0_11] : memref<1x4x256xbf16, #tpu.memory_space<vmem>>, vector<1x4x256xbf16>
    %17 = vector.shape_cast %16 : vector<1x4x256xbf16> to vector<4x256xbf16>
    %cst_12 = arith.constant dense<0.000000e+00> : vector<4x1024xf32>
    %18 = tpu.matmul %17, %14, %cst_12 {dimension_numbers = #tpu.dot_dimension_numbers<[1], [0], [0], [1], [0, 0, 1, 1], [], []>} : vector<4x256xbf16>, vector<256x1024xbf16>, vector<4x1024xf32> -> vector<4x1024xf32>
    %19 = arith.addf %15, %18 : vector<4x1024xf32>
    %c0_13 = arith.constant 0 : index
    %c0_14 = arith.constant 0 : index
    %20 = vector.load %arg11[%c0_13, %c0_14] : memref<4x1024xf32, #tpu.memory_space<vmem>>, vector<4x1024xf32>
    tpu.vector_store %arg11[%c0_13, %c0_14], %19 {strides = array<i32>} : memref<4x1024xf32, #tpu.memory_space<vmem>>, vector<4x1024xf32>,
    %c0_i32_15 = arith.constant 0 : i32
    %21 = arith.cmpi eq, %arg2, %c0_i32_15 : i32
    %22 = arith.extui %21 : i1 to i32
    %c0_i32_16 = arith.constant 0 : i32
    %23 = arith.cmpi ne, %22, %c0_i32_16 : i32
    scf.if %23 {
      %c0_17 = arith.constant 0 : index
      %c0_18 = arith.constant 0 : index
      %24 = vector.load %arg6[%c0_17, %c0_18] : memref<8x4xbf16, #tpu.memory_space<vmem>>, vector<8x4xbf16>
      %c0_19 = arith.constant 0 : index
      %c0_20 = arith.constant 0 : index
      %25 = vector.load %arg11[%c0_19, %c0_20] : memref<4x1024xf32, #tpu.memory_space<vmem>>, vector<4x1024xf32>
      %26 = arith.truncf %25 : vector<4x1024xf32> to vector<4x1024xbf16>
      %cst_21 = arith.constant dense<0.000000e+00> : vector<8x1024xf32>
      %27 = tpu.matmul %24, %26, %cst_21 {dimension_numbers = #tpu.dot_dimension_numbers<[1], [0], [0], [1], [0, 0, 1, 1], [], []>} : vector<8x4xbf16>, vector<4x1024xbf16>, vector<8x1024xf32> -> vector<8x1024xf32>
      %c0_22 = arith.constant 0 : index
      %c0_23 = arith.constant 0 : index
      %28 = vector.load %arg7[%c0_22, %c0_23] : memref<8x1xf32, #tpu.memory_space<vmem>>, vector<8x1xf32>
      %29 = vector.broadcast %28 : vector<8x1xf32> to vector<8x1024xf32>
      %30 = arith.addf %27, %29 : vector<8x1024xf32>
      %c0_24 = arith.constant 0 : index
      %c0_25 = arith.constant 0 : index
      %c0_26 = arith.constant 0 : index
      %31 = vector.load %arg8[%c0_24, %c0_25, %c0_26] : memref<1x8x1024xf32, #tpu.memory_space<vmem>>, vector<1x8x1024xf32>
      %32 = vector.shape_cast %31 : vector<1x8x1024xf32> to vector<8x1024xf32>
      %33 = vector.shape_cast %30 : vector<8x1024xf32> to vector<1x8x1024xf32>
      tpu.vector_store %arg8[%c0_24, %c0_25, %c0_26], %33 {strides = array<i32>} : memref<1x8x1024xf32, #tpu.memory_space<vmem>>, vector<1x8x1024xf32>,
      %cst_27 = arith.constant dense<0.000000e+00> : vector<8xf32>
      %34 = vector.multi_reduction <add>, %30, %cst_27 [1] : vector<8x1024xf32> to vector<8xf32>
      %35 = vector.shape_cast %34 : vector<8xf32> to vector<8x1xf32>
      %c0_28 = arith.constant 0 : index
      %c0_29 = arith.constant 0 : index
      %c0_30 = arith.constant 0 : index
      %c0_31 = arith.constant 0 : index
      %36 = vector.load %arg9[%c0_28, %c0_29, %c0_30, %c0_31] : memref<1x1x8x1xf32, #tpu.memory_space<vmem>>, vector<1x1x8x1xf32>
      %37 = vector.shape_cast %36 : vector<1x1x8x1xf32> to vector<8x1xf32>
      %38 = vector.shape_cast %35 : vector<8x1xf32> to vector<1x1x8x1xf32>
      tpu.vector_store %arg9[%c0_28, %c0_29, %c0_30, %c0_31], %38 {strides = array<i32>} : memref<1x1x8x1xf32, #tpu.memory_space<vmem>>, vector<1x1x8x1xf32>,
      %39 = arith.mulf %30, %30 : vector<8x1024xf32>
      %cst_32 = arith.constant dense<0.000000e+00> : vector<8xf32>
      %40 = vector.multi_reduction <add>, %39, %cst_32 [1] : vector<8x1024xf32> to vector<8xf32>
      %41 = vector.shape_cast %40 : vector<8xf32> to vector<8x1xf32>
      %c0_33 = arith.constant 0 : index
      %c0_34 = arith.constant 0 : index
      %c0_35 = arith.constant 0 : index
      %c0_36 = arith.constant 0 : index
      %42 = vector.load %arg10[%c0_33, %c0_34, %c0_35, %c0_36] : memref<1x1x8x1xf32, #tpu.memory_space<vmem>>, vector<1x1x8x1xf32>
      %43 = vector.shape_cast %42 : vector<1x1x8x1xf32> to vector<8x1xf32>
      %44 = vector.shape_cast %41 : vector<8x1xf32> to vector<1x1x8x1xf32>
      tpu.vector_store %arg10[%c0_33, %c0_34, %c0_35, %c0_36], %44 {strides = array<i32>} : memref<1x1x8x1xf32, #tpu.memory_space<vmem>>, vector<1x1x8x1xf32>,
    } else {
    }
    return
  }
  func.func @transform_0(%arg0: i32, %arg1: i32, %arg2: i32) -> (i32, i32, i32) {
    %c0_i32 = arith.constant 0 : i32
    %c0_i32_0 = arith.constant 0 : i32
    return %arg0, %c0_i32, %arg1 : i32, i32, i32
  }
  func.func @transform_1(%arg0: i32, %arg1: i32, %arg2: i32) -> (i32, i32, i32) {
    %c0_i32 = arith.constant 0 : i32
    %c0_i32_0 = arith.constant 0 : i32
    return %arg0, %arg2, %c0_i32 : i32, i32, i32
  }
  func.func @transform_2(%arg0: i32, %arg1: i32, %arg2: i32) -> (i32, i32, i32) {
    %c0_i32 = arith.constant 0 : i32
    %c0_i32_0 = arith.constant 0 : i32
    return %arg0, %c0_i32, %arg2 : i32, i32, i32
  }
  func.func @transform_3(%arg0: i32, %arg1: i32, %arg2: i32) -> (i32, i32) {
    %c0_i32 = arith.constant 0 : i32
    %c0_i32_0 = arith.constant 0 : i32
    %c0_i32_1 = arith.constant 0 : i32
    return %c0_i32, %c0_i32_0 : i32, i32
  }
  func.func @transform_4(%arg0: i32, %arg1: i32, %arg2: i32) -> (i32, i32) {
    %c0_i32 = arith.constant 0 : i32
    %c0_i32_0 = arith.constant 0 : i32
    %c0_i32_1 = arith.constant 0 : i32
    return %c0_i32, %c0_i32_0 : i32, i32
  }
  func.func @transform_5(%arg0: i32, %arg1: i32, %arg2: i32) -> (i32, i32, i32) {
    %c0_i32 = arith.constant 0 : i32
    %c0_i32_0 = arith.constant 0 : i32
    return %arg0, %c0_i32, %arg1 : i32, i32, i32
  }
  func.func @transform_6(%arg0: i32, %arg1: i32, %arg2: i32) -> (i32, i32, i32, i32) {
    %c0_i32 = arith.constant 0 : i32
    %c0_i32_0 = arith.constant 0 : i32
    %c0_i32_1 = arith.constant 0 : i32
    return %arg0, %arg1, %c0_i32, %c0_i32_0 : i32, i32, i32, i32
  }
  func.func @transform_7(%arg0: i32, %arg1: i32, %arg2: i32) -> (i32, i32, i32, i32) {
    %c0_i32 = arith.constant 0 : i32
    %c0_i32_0 = arith.constant 0 : i32
    %c0_i32_1 = arith.constant 0 : i32
    return %arg0, %arg1, %c0_i32, %c0_i32_0 : i32, i32, i32, i32
  }
}

module attributes {stable_mosaic.version = 11 : i64} {
  func.func @_bn_residual_kernel(%arg0: i32, %arg1: i32, %arg2: memref<1x8x1024xf32, #tpu.memory_space<vmem>>, %arg3: memref<1x8x1024xf32, #tpu.memory_space<vmem>>, %arg4: memref<8x1xf32, #tpu.memory_space<vmem>>, %arg5: memref<8x1xf32, #tpu.memory_space<vmem>>, %arg6: memref<1x8x1024xf32, #tpu.memory_space<vmem>>) attributes {dimension_semantics = [#tpu.dimension_semantics<parallel>, #tpu.dimension_semantics<parallel>], iteration_bounds = array<i64: 2, 1>, scalar_prefetch = 0 : i64, scratch_operands = 0 : i64, tpu.core_type = #tpu.core_type<tc>, window_params = [{transform_indices = @transform_0, window_bounds = array<i64: 1, 8, 1024>}, {transform_indices = @transform_1, window_bounds = array<i64: 1, 8, 1024>}, {pipeline_mode = #tpu.pipeline_mode<synchronous>, transform_indices = @transform_2, window_bounds = array<i64: 8, 1>}, {pipeline_mode = #tpu.pipeline_mode<synchronous>, transform_indices = @transform_3, window_bounds = array<i64: 8, 1>}, {transform_indices = @transform_4, window_bounds = array<i64: 1, 8, 1024>}]} {
    %c0 = arith.constant 0 : index
    %c0_0 = arith.constant 0 : index
    %c0_1 = arith.constant 0 : index
    %0 = vector.load %arg2[%c0, %c0_0, %c0_1] : memref<1x8x1024xf32, #tpu.memory_space<vmem>>, vector<1x8x1024xf32>
    %1 = vector.shape_cast %0 : vector<1x8x1024xf32> to vector<8x1024xf32>
    %c0_2 = arith.constant 0 : index
    %c0_3 = arith.constant 0 : index
    %2 = vector.load %arg4[%c0_2, %c0_3] : memref<8x1xf32, #tpu.memory_space<vmem>>, vector<8x1xf32>
    %3 = vector.broadcast %2 : vector<8x1xf32> to vector<8x1024xf32>
    %4 = arith.mulf %1, %3 : vector<8x1024xf32>
    %c0_4 = arith.constant 0 : index
    %c0_5 = arith.constant 0 : index
    %5 = vector.load %arg5[%c0_4, %c0_5] : memref<8x1xf32, #tpu.memory_space<vmem>>, vector<8x1xf32>
    %6 = vector.broadcast %5 : vector<8x1xf32> to vector<8x1024xf32>
    %7 = arith.addf %4, %6 : vector<8x1024xf32>
    %c0_6 = arith.constant 0 : index
    %c0_7 = arith.constant 0 : index
    %c0_8 = arith.constant 0 : index
    %8 = vector.load %arg3[%c0_6, %c0_7, %c0_8] : memref<1x8x1024xf32, #tpu.memory_space<vmem>>, vector<1x8x1024xf32>
    %9 = vector.shape_cast %8 : vector<1x8x1024xf32> to vector<8x1024xf32>
    %10 = arith.addf %7, %9 : vector<8x1024xf32>
    %c0_9 = arith.constant 0 : index
    %c0_10 = arith.constant 0 : index
    %c0_11 = arith.constant 0 : index
    %11 = vector.load %arg6[%c0_9, %c0_10, %c0_11] : memref<1x8x1024xf32, #tpu.memory_space<vmem>>, vector<1x8x1024xf32>
    %12 = vector.shape_cast %11 : vector<1x8x1024xf32> to vector<8x1024xf32>
    %13 = vector.shape_cast %10 : vector<8x1024xf32> to vector<1x8x1024xf32>
    tpu.vector_store %arg6[%c0_9, %c0_10, %c0_11], %13 {strides = array<i32>} : memref<1x8x1024xf32, #tpu.memory_space<vmem>>, vector<1x8x1024xf32>,
    return
  }
  func.func @transform_0(%arg0: i32, %arg1: i32) -> (i32, i32, i32) {
    %c0_i32 = arith.constant 0 : i32
    %c0_i32_0 = arith.constant 0 : i32
    return %arg0, %c0_i32, %arg1 : i32, i32, i32
  }
  func.func @transform_1(%arg0: i32, %arg1: i32) -> (i32, i32, i32) {
    %c0_i32 = arith.constant 0 : i32
    %c0_i32_0 = arith.constant 0 : i32
    return %arg0, %c0_i32, %arg1 : i32, i32, i32
  }
  func.func @transform_2(%arg0: i32, %arg1: i32) -> (i32, i32) {
    %c0_i32 = arith.constant 0 : i32
    %c0_i32_0 = arith.constant 0 : i32
    %c0_i32_1 = arith.constant 0 : i32
    return %c0_i32, %c0_i32_0 : i32, i32
  }
  func.func @transform_3(%arg0: i32, %arg1: i32) -> (i32, i32) {
    %c0_i32 = arith.constant 0 : i32
    %c0_i32_0 = arith.constant 0 : i32
    %c0_i32_1 = arith.constant 0 : i32
    return %c0_i32, %c0_i32_0 : i32, i32
  }
  func.func @transform_4(%arg0: i32, %arg1: i32) -> (i32, i32, i32) {
    %c0_i32 = arith.constant 0 : i32
    %c0_i32_0 = arith.constant 0 : i32
    return %arg0, %c0_i32, %arg1 : i32, i32, i32
  }
}

</mosaic_0001>

<bundles_post_ra>
// kernel: nonlocal_block_forward.3
= control target key start
LH: loop header
LB: loop body
LE: loop exit
PB: predicated region body
PF: predicated region fallthrough
CT: control target
= control target key end

     0   :  { %s1494_s11 = smov 0   ;;  %s1496_s12 = smov 0   ;;  %s1609_s0 = inlined_call_operand.vmem [shape: f32[2,8,1024], index: 0, kind: input, shape index: {}]   ;;  %s1610_s1 = inlined_call_operand.vmem [shape: bf16[1,8], index: 1, kind: input, shape index: {}]   ;;  %s1611_s2 = inlined_call_operand.<no memory space> [shape: f32[1,1], index: 2, kind: input, shape index: {}]   ;;  %s1612_s3 = inlined_call_operand.vmem [shape: bf16[4,8], index: 3, kind: input, shape index: {}]   ;;  %s1613_s4 = inlined_call_operand.vmem [shape: f32[4,1], index: 4, kind: input, shape index: {}]   ;;  %s1614_s5 = inlined_call_operand.vmem [shape: bf16[4,8], index: 5, kind: input, shape index: {}]   ;;  %s1615_s6 = inlined_call_operand.vmem [shape: f32[4,1], index: 6, kind: input, shape index: {}]   ;;  %s1616_s7 = inlined_call_operand.vmem [shape: f32[2,1,1024], index: 7, kind: output, shape index: {0}]   ;;  %s1617_s8 = inlined_call_operand.vmem [shape: bf16[2,4,1024], index: 8, kind: output, shape index: {1}]   ;;  %s1618_s9 = inlined_call_operand.vmem [shape: bf16[2,4,1024], index: 9, kind: output, shape index: {2}]  }
   0x1   :  { %v15_v0 = vstv %s1611_s2  ;;  %s1498_s13 = smov 0  }
   0x2   :  { %16 = vst [vmem:[#allocation2] sm:$0x1] %v15_v0 }
   0x3 LB: > { %s34_s2 = sadd.s32 1, %s1432_s12  ;;  %p1340_p0 = scmp.ge.s32.totalorder %s1436_s13, 1  ;;  %s1436_s13 = sphi %s1498_s13, %s22_s13   ;;  %s1432_s12 = sphi %s1496_s12, %s1620_s12   ;;  %s1428_s11 = sphi %s1494_s11, %s1619_s11  }
   0x4   : > { %p36_p1 = scmp.ge.s32.totalorder %s34_s2, 2  ;;  %p319_p2 = scmp.lt.s32.totalorder %s1436_s13, 3 }
   0x6   : > { %s1622_s2 = smov (%p36_p1, %s34_s2), 0  ;;  %p320_p3 = pnand %p1340_p0, %p319_p2 }
   0x7   : > { %p381_p4 = scmp.lt.s32.totalorder (!%p320_p3), %s1428_s11, 1  ;;  %v1438_v1 = vmov (!%p320_p3), 0   ;;  %v874_v3 = vld [vmem:[%s1615_s6] sm:$0xf] (!%p320_p3)  ;;  %vm451_vm0 = vcmask (!%p320_p3), 1043456   ;;  %vm447_vm1 = vcmask (!%p320_p3), 64512   ;;  %v443_v28 = vlaneseq (!%p320_p3) }
   0x8   : > { %323 = sbr.rel (%p320_p3) target bundleno = 288 (0x120), region = 48  ;;  %508 = vmatprep.mubr.bf16.mxu0 (!%p320_p3), %v1438_v1  ;;  %549 = vmatprep.mubr.bf16.mxu1 (!%p320_p3), %v1438_v1  ;;  %v700_v4 = vld [vmem:[%s1613_s4] sm:$0xf] (!%p320_p3)  ;;  %v1439_v31 = vmov (!%p320_p3), 1966171168  }
   0x9   : > { %v437_v2 = vld [vmem:[#allocation2] sm:$0x1] (!%p320_p3)  ;;  %1412 = vset.pattern.permute.xlu0 (!%p320_p3), %v1438_v1  ;;  %1413 = vset.pattern.permute.xlu1 (!%p320_p3), %v1438_v1  ;;  %v444_v29 = vshrl.u32 (!%p320_p3), %v443_v28, 7  ;;  %v653_v32 = vunpack.c.l.s4 (!%p320_p3), %v1439_v31  ;;  %v1440_v58 = vmov (!%p320_p3), 1983009808  }
   0xa   : > { %440 = vperm.xlu0 (!%p320_p3), %1412, %v437_v2   ;;  %877 = vperm.xlu1 (!%p320_p3), %1413, %v874_v3   ;;  %v436_v23 = vld [vmem:[%s1610_s1] sm:$0x1] (!%p320_p3)  ;;  %v1066_v59 = vunpack.c.l.s4 (!%p320_p3), %v1440_v58 }
   0xb   : > { %v699_v26 = vld [vmem:[%s1612_s3] sm:$0x3] (!%p320_p3)  ;;  %v445_v30 = vsub.s32 (!%p320_p3), 0, %v444_v29  ;;  %v654_v35 = vunpack.c.0.s8 (!%p320_p3), %v653_v32 }
   0xc   : > { %v873_v27 = vld [vmem:[%s1614_s5] sm:$0x3] (!%p320_p3) }
   0xd   : > { %v657_v40 = vsub.s32 (!%p320_p3), %v654_v35, %v444_v29 }
   0xe   : > { %703 = vperm.xlu0 (!%p320_p3), %1412, %v700_v4  }
   0xf   : > { %s1624_s11 = smov (!%p381_p4, %s1428_s11), 1 }
  0x10   : > { %s1382_s16 = sshll.u32 %s1624_s11, 6  ;;  %s1343_s28 = sshll.u32 %s1624_s11, 3 }
  0x11   : > { %s388_s21 = scalar_lea.vmem %s1609_s0, %s1382_s16  ;;  %s397_s10 = scalar_lea.vmem %s1616_s7, %s1343_s28 }
  0x12   : > { %v421_v5 = vld [vmem:[%s388_s21 + $0x8] sm:$0xff]  ;;  %v423_v6 = vld [vmem:[%s388_s21 + $0x18] sm:$0xff]  ;;  %v420_v7 = vld [vmem:[%s388_s21] sm:$0xff]  ;;  %s1383_s14 = sshll.u32 %s1624_s11, 4 }
  0x13   : > { %v429_v8 = vpack.c.bf16 %v421_v5, %v421_v5  ;;  %v431_v9 = vpack.c.bf16 %v423_v6, %v423_v6  ;;  %v428_v10 = vpack.c.bf16 %v420_v7, %v420_v7  ;;  %v422_v11 = vld [vmem:[%s388_s21 + $0x10] sm:$0xff]  ;;  %v425_v12 = vld [vmem:[%s388_s21 + $0x28] sm:$0xff]  ;;  %v427_v13 = vld [vmem:[%s388_s21 + $0x38] sm:$0xff]  ;;  %v1067_v6 = vunpack.c.0.s8 %v1066_v59  ;;  %s407_s17 = scalar_lea.vmem %s1617_s8, %s1383_s14  ;;  %s417_s20 = scalar_lea.vmem %s1618_s9, %s1383_s14 }
  0x14   : > { %v430_v14 = vpack.c.bf16 %v422_v11, %v422_v11  ;;  %v433_v15 = vpack.c.bf16 %v425_v12, %v425_v12  ;;  %v435_v16 = vpack.c.bf16 %v427_v13, %v427_v13  ;;  %v424_v17 = vld [vmem:[%s388_s21 + $0x20] sm:$0xff]  ;;  %v426_v18 = vld [vmem:[%s388_s21 + $0x30] sm:$0xff] }
  0x15   : > { %1348 = vmatprep.subr.msk.bf16.mxu0 %vm451_vm0, %v429_v8  ;;  %1350 = vmatprep.subr.msk.bf16.mxu1 %vm451_vm0, %v431_v9  ;;  %v453_v19 = vsel %vm451_vm0, %v428_v10, 0  ;;  %v432_v20 = vpack.c.bf16 %v424_v17, %v424_v17  ;;  %v434_v21 = vpack.c.bf16 %v426_v18, %v426_v18 }
  0x16   : > { %477 = vmatpush1.bf16.msra.mxu0 %v453_v19  ;;  %v459_v22 = vsel %vm451_vm0, %v430_v14, 0 }
  0x17   : > { %518 = vmatpush1.bf16.msra.mxu1 %v459_v22  ;;  %1352 = vmatprep.subr.msk.bf16.mxu0 %vm451_vm0, %v433_v15  ;;  %v465_v24 = vsel %vm451_vm0, %v432_v20, 0  ;;  %v471_v25 = vsel %vm451_vm0, %v434_v21, 0 }
  0x18   : > { %1354 = vmatprep.subr.msk.bf16.mxu1 %vm451_vm0, %v435_v16 }
  0x19   : > { %1349 = vmatmul.mubr.msk.bf16.vlgmr.msra.gmra.mrb[0].mxu0 %vm447_vm1, %v436_v23 }
  0x1a   : > { %1351 = vmatmul.mubr.msk.bf16.vlgmr.msra.gmra.mrb[0].mxu1 %vm447_vm1, %v436_v23  ;;  %559 = vmatpush1.bf16.msra.mxu0 %v465_v24 }
  0x1b   : > { %600 = vmatpush1.bf16.msra.mxu1 %v471_v25  ;;  %590 = vmatprep.mubr.bf16.mxu0 %v1438_v1 }
  0x1c   : > { %631 = vmatprep.mubr.bf16.mxu1 %v1438_v1  ;;  %1356 = vmatprep.subr.msk.bf16.mxu0 %vm451_vm0, %v429_v8 }
  0x1d   : > { %1358 = vmatprep.subr.msk.bf16.mxu1 %vm451_vm0, %v431_v9 }
  0x21   : > { %1353 = vmatmul.mubr.msk.bf16.vlgmr.msra.gmra.mrb[4].mxu0 %vm447_vm1, %v436_v23 }
  0x22   : > { %1355 = vmatmul.mubr.msk.bf16.vlgmr.msra.gmra.mrb[4].mxu1 %vm447_vm1, %v436_v23  ;;  %710 = vmatpush1.bf16.msra.mxu0 %v453_v19 }
  0x23   : > { %751 = vmatpush1.bf16.msra.mxu1 %v459_v22  ;;  %741 = vmatprep.mubr.bf16.mxu0 %v1438_v1 }
  0x24   : > { %782 = vmatprep.mubr.bf16.mxu1 %v1438_v1  ;;  %1360 = vmatprep.subr.msk.bf16.mxu0 %vm451_vm0, %v433_v15 }
  0x25   : > { %1362 = vmatprep.subr.msk.bf16.mxu1 %vm451_vm0, %v435_v16 }
  0x29   : > { %1357 = vmatmul.mubr.msk.bf16.vlgmr.msra.gmra.mrb[8].mxu0 %vm447_vm1, %v699_v26 }
  0x2a   : > { %1359 = vmatmul.mubr.msk.bf16.vlgmr.msra.gmra.mrb[8].mxu1 %vm447_vm1, %v699_v26  ;;  %792 = vmatpush1.bf16.msra.mxu0 %v465_v24 }
  0x2b   : > { %833 = vmatpush1.bf16.msra.mxu1 %v471_v25  ;;  %823 = vmatprep.mubr.bf16.mxu0 %v1438_v1 }
  0x2c   : > { %864 = vmatprep.mubr.bf16.mxu1 %v1438_v1  ;;  %1364 = vmatprep.subr.msk.bf16.mxu0 %vm451_vm0, %v429_v8 }
  0x2d   : > { %1366 = vmatprep.subr.msk.bf16.mxu1 %vm451_vm0, %v431_v9 }
  0x31   : > { %1361 = vmatmul.mubr.msk.bf16.vlgmr.msra.gmra.mrb[12].mxu0 %vm447_vm1, %v699_v26 }
  0x32   : > { %1363 = vmatmul.mubr.msk.bf16.vlgmr.msra.gmra.mrb[12].mxu1 %vm447_vm1, %v699_v26  ;;  %884 = vmatpush1.bf16.msra.mxu0 %v453_v19 }
  0x33   : > { %925 = vmatpush1.bf16.msra.mxu1 %v459_v22  ;;  %915 = vmatprep.mubr.bf16.mxu0 %v1438_v1 }
  0x34   : > { %956 = vmatprep.mubr.bf16.mxu1 %v1438_v1  ;;  %1368 = vmatprep.subr.msk.bf16.mxu0 %vm451_vm0, %v433_v15  ;;  %v1576_v15 = vsub.s32 %v1067_v6, %v444_v29 }
  0x35   : > { %1370 = vmatprep.subr.msk.bf16.mxu1 %vm451_vm0, %v435_v16 }
  0x39   : > { %1365 = vmatmul.mubr.msk.bf16.vlgmr.msra.gmra.mrb[16].mxu0 %vm447_vm1, %v873_v27 }
  0x3a   : > { %1367 = vmatmul.mubr.msk.bf16.vlgmr.msra.gmra.mrb[16].mxu1 %vm447_vm1, %v873_v27  ;;  %966 = vmatpush1.bf16.msra.mxu0 %v465_v24 }
  0x3b   : > { %1007 = vmatpush1.bf16.msra.mxu1 %v471_v25  ;;  %997 = vmatprep.mubr.bf16.mxu0 %v1438_v1 }
  0x3c   : > { %1038 = vmatprep.mubr.bf16.mxu1 %v1438_v1 }
  0x41   : > { %1369 = vmatmul.mubr.msk.bf16.vlgmr.msra.gmra.mrb[20].mxu0 %vm447_vm1, %v873_v27 }
  0x42   : > { %1371 = vmatmul.mubr.msk.bf16.vlgmr.msra.gmra.mrb[20].mxu1 %vm447_vm1, %v873_v27 }
  0x89   : > { %v441_v33 = vpop.permute.xlu0 %440 }
  0x8a   : > { %v446_v34 = vrot.slane %v441_v33, %v445_v30 }
  0x8d   : > { %v704_v8 = vpop.permute.xlu0 %703 }
  0xec   : > { %v510_v36 = vpop.f32.mrb[0].mxu0 }
  0xed   : > { %v511_v37 = vadd.f32 %v510_v36, %v446_v34  ;;  %v551_v38 = vpop.f32.mrb[0].mxu1  ;;  %v512_v39 = vpop.f32.mrb[1].mxu0 }
  0xee   : > { %v552_v41 = vadd.f32 %v551_v38, %v446_v34  ;;  %v513_v42 = vadd.f32 %v512_v39, %v446_v34  ;;  %v553_v43 = vpop.f32.mrb[1].mxu1  ;;  %v514_v44 = vpop.f32.mrb[2].mxu0 }
  0xef   : > { %v554_v45 = vadd.f32 %v553_v43, %v446_v34  ;;  %v555_v46 = vpop.f32.mrb[2].mxu1  ;;  %v515_v47 = vpop.f32.mrb[3].mxu0 }
  0xf0   : > { %v648_v48 = vcombine.low %v511_v37, %v513_v42  ;;  %v556_v49 = vpop.f32.mrb[3].mxu1  ;;  %v878_v47 = vpop.permute.xlu1 %877 }
  0xf1   : > { %v649_v50 = vcombine.low %v552_v41, %v554_v45 }
  0xf2   : > { %v658_v51 = vrot.slane %v648_v48, %v657_v40 }
  0xf3   : > { %v665_v52 = vrot.slane %v649_v50, %v657_v40 }
  0xf4   : > { %v592_v53 = vpop.f32.mrb[4].mxu0 }
  0xf5   : > { %v680_v54 = vcombine.low %v658_v51, %v665_v52  ;;  %v593_v55 = vadd.f32 %v592_v53, %v446_v34  ;;  %v633_v56 = vpop.f32.mrb[4].mxu1  ;;  %v594_v57 = vpop.f32.mrb[5].mxu0 }
  0xf6   : > { %v634_v60 = vadd.f32 %v633_v56, %v446_v34  ;;  %v595_v61 = vadd.f32 %v594_v57, %v446_v34  ;;  %v635_v62 = vpop.f32.mrb[5].mxu1  ;;  %v596_v63 = vpop.f32.mrb[6].mxu0 }
  0xf7   : > { %v636_v0 = vadd.f32 %v635_v62, %v446_v34  ;;  %v637_v1 = vpop.f32.mrb[6].mxu1  ;;  %v597_v2 = vpop.f32.mrb[7].mxu0  ;;  %v688_v20 = vrot.slane %v680_v54, %v657_v40 }
  0xf8   : > { %v650_v3 = vcombine.low %v593_v55, %v595_v61  ;;  %v638_v4 = vpop.f32.mrb[7].mxu1 }
  0xf9   : > { %v651_v5 = vcombine.low %v634_v60, %v636_v0 }
  0xfa   : > { %v672_v7 = vrot.slane %v650_v3, %v657_v40 }
  0xfb   : > { %v679_v9 = vrot.slane %v651_v5, %v657_v40 }
  0xfc   : > { %v743_v10 = vpop.f32.mrb[8].mxu0 }
  0xfd   : > { %v681_v11 = vcombine.low %v672_v7, %v679_v9  ;;  %v784_v12 = vpop.f32.mrb[8].mxu1  ;;  %v744_v13 = vadd.f32 %v743_v10, %v704_v8  ;;  %v745_v14 = vpop.f32.mrb[9].mxu0 }
  0xfe   : > { %v746_v16 = vadd.f32 %v745_v14, %v704_v8  ;;  %v785_v17 = vadd.f32 %v784_v12, %v704_v8  ;;  %v786_v18 = vpop.f32.mrb[9].mxu1  ;;  %v747_v19 = vpop.f32.mrb[10].mxu0 }
  0xff   : > { %v695_v21 = vrot.slane %v681_v11, %v657_v40  ;;  %v787_v22 = vadd.f32 %v786_v18, %v704_v8  ;;  %v788_v23 = vpop.f32.mrb[10].mxu1  ;;  %v748_v24 = vpop.f32.mrb[11].mxu0 }
 0x100   : > { %v1372_v25 = vpack.c.bf16 %v746_v16, %v744_v13  ;;  %v789_v26 = vpop.f32.mrb[11].mxu1 }
 0x101   : > { %v696_v27 = vcombine.low %v688_v20, %v695_v21  ;;  %v1373_v28 = vpack.c.bf16 %v787_v22, %v785_v17 }
 0x102   : > { %v1071_v29 = vrot.slane %v1372_v25, %v1576_v15 }
 0x103   : > { %698 = vst [vmem:[%s397_s10] sm:$0xff] %v696_v27  ;;  %v1078_v30 = vrot.slane %v1373_v28, %v1576_v15 }
 0x104   : > { %v825_v31 = vpop.f32.mrb[12].mxu0 }
 0x105   : > { %v1079_v32 = vcombine.low %v1071_v29, %v1078_v30  ;;  %v826_v33 = vadd.f32 %v825_v31, %v704_v8  ;;  %v866_v34 = vpop.f32.mrb[12].mxu1  ;;  %v827_v35 = vpop.f32.mrb[13].mxu0 }
 0x106   : > { %v867_v36 = vadd.f32 %v866_v34, %v704_v8  ;;  %v828_v37 = vadd.f32 %v827_v35, %v704_v8  ;;  %v868_v38 = vpop.f32.mrb[13].mxu1  ;;  %v829_v39 = vpop.f32.mrb[14].mxu0 }
 0x107   : > { %1099 = vst [vmem:[%s407_s17] sm:$0xff] %v1079_v32  ;;  %v869_v40 = vadd.f32 %v868_v38, %v704_v8  ;;  %v870_v41 = vpop.f32.mrb[14].mxu1  ;;  %v830_v42 = vpop.f32.mrb[15].mxu0 }
 0x108   : > { %v1374_v43 = vpack.c.bf16 %v828_v37, %v826_v33  ;;  %v871_v44 = vpop.f32.mrb[15].mxu1 }
 0x109   : > { %v1375_v45 = vpack.c.bf16 %v869_v40, %v867_v36 }
 0x10a   : > { %v1088_v46 = vrot.slane %v1374_v43, %v1576_v15 }
 0x10b   : > { %v1095_v48 = vrot.slane %v1375_v45, %v1576_v15 }
 0x10c   : > { %v917_v49 = vpop.f32.mrb[16].mxu0 }
 0x10d   : > { %v1096_v50 = vcombine.low %v1088_v46, %v1095_v48  ;;  %v958_v51 = vpop.f32.mrb[16].mxu1  ;;  %v918_v52 = vadd.f32 %v917_v49, %v878_v47  ;;  %v919_v53 = vpop.f32.mrb[17].mxu0 }
 0x10e   : > { %v920_v54 = vadd.f32 %v919_v53, %v878_v47  ;;  %v959_v55 = vadd.f32 %v958_v51, %v878_v47  ;;  %v960_v56 = vpop.f32.mrb[17].mxu1  ;;  %v921_v57 = vpop.f32.mrb[18].mxu0 }
 0x10f   : > { %1100 = vst [vmem:[%s407_s17 + $0x8] sm:$0xff] %v1096_v50  ;;  %v961_v58 = vadd.f32 %v960_v56, %v878_v47  ;;  %v962_v59 = vpop.f32.mrb[18].mxu1  ;;  %v922_v60 = vpop.f32.mrb[19].mxu0 }
 0x110   : > { %v1376_v61 = vpack.c.bf16 %v920_v54, %v918_v52  ;;  %v963_v62 = vpop.f32.mrb[19].mxu1 }
 0x111   : > { %v1377_v63 = vpack.c.bf16 %v961_v58, %v959_v55 }
 0x112   : > { %v1125_v0 = vrot.slane %v1376_v61, %v1576_v15 }
 0x113   : > { %v1132_v1 = vrot.slane %v1377_v63, %v1576_v15 }
 0x114   : > { %v999_v2 = vpop.f32.mrb[20].mxu0 }
 0x115   : > { %v1133_v3 = vcombine.low %v1125_v0, %v1132_v1  ;;  %v1000_v4 = vadd.f32 %v999_v2, %v878_v47  ;;  %v1040_v5 = vpop.f32.mrb[20].mxu1  ;;  %v1001_v6 = vpop.f32.mrb[21].mxu0 }
 0x116   : > { %v1041_v7 = vadd.f32 %v1040_v5, %v878_v47  ;;  %v1002_v8 = vadd.f32 %v1001_v6, %v878_v47  ;;  %v1042_v9 = vpop.f32.mrb[21].mxu1  ;;  %v1003_v10 = vpop.f32.mrb[22].mxu0 }
 0x117   : > { %1153 = vst [vmem:[%s417_s20] sm:$0xff] %v1133_v3  ;;  %v1043_v11 = vadd.f32 %v1042_v9, %v878_v47  ;;  %v1044_v12 = vpop.f32.mrb[22].mxu1  ;;  %v1004_v13 = vpop.f32.mrb[23].mxu0 }
 0x118   : > { %v1378_v14 = vpack.c.bf16 %v1002_v8, %v1000_v4  ;;  %v1045_v16 = vpop.f32.mrb[23].mxu1 }
 0x119   : > { %v1379_v17 = vpack.c.bf16 %v1043_v11, %v1041_v7 }
 0x11a   : > { %v1142_v18 = vrot.slane %v1378_v14, %v1576_v15 }
 0x11b   : > { %v1149_v19 = vrot.slane %v1379_v17, %v1576_v15 }
 0x11d   : > { %v1150_v20 = vcombine.low %v1142_v18, %v1149_v19 }
 0x11f   : > { %1154 = vst [vmem:[%s417_s20 + $0x8] sm:$0xff] %v1150_v20 }
 0x120 PF: > { %s22_s13 = sadd.s32 1, %s1436_s13   ;;  %s1619_s11 = smov %s1432_s12 }
 0x121   : > { %p19_p5 = scmp.ge.s32.totalorder %s22_s13, 4   ;;  %s1620_s12 = smov %s1622_s2 }
 0x123   :  { %21 = sbr.rel (!%p19_p5) target bundleno = 3 (0x3), region = 102 }

// kernel: nonlocal_block_forward.5
= control target key start
LH: loop header
LB: loop body
LE: loop exit
PB: predicated region body
PF: predicated region fallthrough
CT: control target
= control target key end

     0   :  { %s530_s15 = smov 0   ;;  %s532_s16 = smov 0   ;;  %s577_s0 = inlined_call_operand.vmem [shape: f32[2,8,1024], index: 0, kind: input, shape index: {}, may-alias: {0,4}]   ;;  %s578_s1 = inlined_call_operand.vmem [shape: f32[2,8,1024], index: 1, kind: input, shape index: {}]   ;;  %s579_s2 = inlined_call_operand.vmem [shape: f32[8,1], index: 2, kind: input, shape index: {}]   ;;  %s580_s3 = inlined_call_operand.vmem [shape: f32[8,1], index: 3, kind: input, shape index: {}]   ;;  %s581_s4 = inlined_call_operand.vmem [shape: f32[2,8,1024], index: 4, kind: output, shape index: {}, may-alias: {0,4}]  }
   0x1   :  { %s534_s17 = smov 0  }
   0x2 LB: > { %s26_s18 = sadd.s32 1, %s498_s16  ;;  %p442_p0 = scmp.ge.s32.totalorder %s502_s17, 1  ;;  %s502_s17 = sphi %s534_s17, %s14_s17   ;;  %s498_s16 = sphi %s532_s16, %s583_s16   ;;  %s494_s15 = sphi %s530_s15, %s582_s15  }
   0x3   : > { %p28_p1 = scmp.ge.s32.totalorder %s26_s18, 2  ;;  %p200_p2 = scmp.lt.s32.totalorder %s502_s17, 3 }
   0x5   : > { %s585_s18 = smov (%p28_p1, %s26_s18), 0  ;;  %p201_p3 = pnand %p442_p0, %p200_p2 }
   0x6   : > { %v281_v0 = vld [vmem:[%s579_s2] sm:$0xff] (!%p201_p3)  ;;  %v504_v1 = vmov (!%p201_p3), 0   ;;  %p244_p4 = scmp.lt.s32.totalorder (!%p201_p3), %s494_s15, 1 }
   0x7   : > { %204 = sbr.rel (%p201_p3) target bundleno = 148 (0x94), region = 36  ;;  %479 = vset.pattern.permute.xlu0 (!%p201_p3), %v504_v1  ;;  %v295_v2 = vld [vmem:[%s580_s3] sm:$0xff] (!%p201_p3) }
   0x8   : > { %284 = vperm.xlu0 (!%p201_p3), %479, %v281_v0  }
   0xc   : > { %298 = vperm.xlu0 (!%p201_p3), %479, %v295_v2  }
   0xe   : > { %s587_s15 = smov (!%p244_p4, %s494_s15), 1 }
   0xf   : > { %s554_s23 = sshll.u32 %s587_s15, 6 }
  0x10   : > { %s251_s26 = scalar_lea.vmem %s577_s0, %s554_s23  ;;  %s261_s29 = scalar_lea.vmem %s578_s1, %s554_s23 }
  0x11   : > { %v273_v3 = vld [vmem:[%s251_s26] sm:$0xff]  ;;  %v274_v4 = vld [vmem:[%s251_s26 + $0x8] sm:$0xff]  ;;  %v275_v6 = vld [vmem:[%s251_s26 + $0x10] sm:$0xff]  ;;  %s271_s6 = scalar_lea.vmem %s581_s4, %s554_s23 }
  0x12   : > { %v276_v7 = vld [vmem:[%s251_s26 + $0x18] sm:$0xff]  ;;  %v277_v8 = vld [vmem:[%s251_s26 + $0x20] sm:$0xff]  ;;  %v278_v9 = vld [vmem:[%s251_s26 + $0x28] sm:$0xff] }
  0x13   : > { %v279_v10 = vld [vmem:[%s251_s26 + $0x30] sm:$0xff]  ;;  %v280_v11 = vld [vmem:[%s251_s26 + $0x38] sm:$0xff]  ;;  %v309_v16 = vld [vmem:[%s261_s29] sm:$0xff] }
  0x14   : > { %v310_v17 = vld [vmem:[%s261_s29 + $0x8] sm:$0xff]  ;;  %v311_v23 = vld [vmem:[%s261_s29 + $0x10] sm:$0xff]  ;;  %v312_v24 = vld [vmem:[%s261_s29 + $0x18] sm:$0xff] }
  0x15   : > { %v313_v25 = vld [vmem:[%s261_s29 + $0x20] sm:$0xff]  ;;  %v314_v30 = vld [vmem:[%s261_s29 + $0x28] sm:$0xff]  ;;  %v315_v31 = vld [vmem:[%s261_s29 + $0x30] sm:$0xff] }
  0x16   : > { %v316_v32 = vld [vmem:[%s261_s29 + $0x38] sm:$0xff] }
  0x87   : > { %v285_v5 = vpop.permute.xlu0 %284 }
  0x88   : > { %v287_v12 = vmul.f32 %v285_v5, %v273_v3  ;;  %v288_v13 = vmul.f32 %v285_v5, %v274_v4  ;;  %v289_v14 = vmul.f32 %v285_v5, %v275_v6  ;;  %v290_v15 = vmul.f32 %v285_v5, %v276_v7 }
  0x89   : > { %v291_v19 = vmul.f32 %v285_v5, %v277_v8  ;;  %v292_v20 = vmul.f32 %v285_v5, %v278_v9  ;;  %v293_v21 = vmul.f32 %v285_v5, %v279_v10  ;;  %v294_v22 = vmul.f32 %v285_v5, %v280_v11 }
  0x8b   : > { %v299_v18 = vpop.permute.xlu0 %298 }
  0x8c   : > { %v301_v26 = vadd.f32 %v299_v18, %v287_v12  ;;  %v302_v27 = vadd.f32 %v299_v18, %v288_v13  ;;  %v303_v28 = vadd.f32 %v299_v18, %v289_v14  ;;  %v304_v29 = vadd.f32 %v299_v18, %v290_v15 }
  0x8d   : > { %v305_v33 = vadd.f32 %v299_v18, %v291_v19  ;;  %v306_v34 = vadd.f32 %v299_v18, %v292_v20  ;;  %v307_v35 = vadd.f32 %v299_v18, %v293_v21  ;;  %v308_v36 = vadd.f32 %v299_v18, %v294_v22 }
  0x8e   : > { %v317_v37 = vadd.f32 %v309_v16, %v301_v26  ;;  %v318_v38 = vadd.f32 %v310_v17, %v302_v27  ;;  %v319_v39 = vadd.f32 %v311_v23, %v303_v28  ;;  %v320_v40 = vadd.f32 %v312_v24, %v304_v29 }
  0x8f   : > { %v321_v41 = vadd.f32 %v313_v25, %v305_v33  ;;  %v322_v42 = vadd.f32 %v314_v30, %v306_v34  ;;  %v323_v43 = vadd.f32 %v315_v31, %v307_v35  ;;  %v324_v44 = vadd.f32 %v316_v32, %v308_v36 }
  0x90   : > { %325 = vst [vmem:[%s271_s6] sm:$0xff] %v317_v37  ;;  %326 = vst [vmem:[%s271_s6 + $0x8] sm:$0xff] %v318_v38 }
  0x91   : > { %327 = vst [vmem:[%s271_s6 + $0x10] sm:$0xff] %v319_v39  ;;  %328 = vst [vmem:[%s271_s6 + $0x18] sm:$0xff] %v320_v40 }
  0x92   : > { %329 = vst [vmem:[%s271_s6 + $0x20] sm:$0xff] %v321_v41  ;;  %330 = vst [vmem:[%s271_s6 + $0x28] sm:$0xff] %v322_v42 }
  0x93   : > { %331 = vst [vmem:[%s271_s6 + $0x30] sm:$0xff] %v323_v43  ;;  %332 = vst [vmem:[%s271_s6 + $0x38] sm:$0xff] %v324_v44 }
  0x94 PF: > { %s14_s17 = sadd.s32 1, %s502_s17   ;;  %s582_s15 = smov %s498_s16 }
  0x95   : > { %p11_p5 = scmp.ge.s32.totalorder %s14_s17, 4   ;;  %s583_s16 = smov %s585_s18 }
  0x97   :  { %13 = sbr.rel (!%p11_p5) target bundleno = 2 (0x2), region = 69 }

// kernel: nonlocal_block_forward.4
= control target key start
LH: loop header
LB: loop body
LE: loop exit
PB: predicated region body
PF: predicated region fallthrough
CT: control target
= control target key end

     0   :  { %s2368_s24 = smov 0   ;;  %s2370_s25 = smov 0   ;;  %s3120_s0 = inlined_call_operand.vmem [shape: f32[2,1,1024], index: 0, kind: input, shape index: {}]   ;;  %s3121_s1 = inlined_call_operand.vmem [shape: f32[2,256,1], index: 1, kind: input, shape index: {}]   ;;  %s3122_s2 = inlined_call_operand.vmem [shape: bf16[2,4,256], index: 2, kind: input, shape index: {}]   ;;  %s3123_s3 = inlined_call_operand.vmem [shape: bf16[8,4], index: 3, kind: input, shape index: {}]   ;;  %s3124_s4 = inlined_call_operand.vmem [shape: f32[8,1], index: 4, kind: input, shape index: {}]   ;;  %s3125_s5 = inlined_call_operand.vmem [shape: f32[2,8,1024], index: 5, kind: output, shape index: {0}]   ;;  %s3126_s6 = inlined_call_operand.vmem [shape: f32[2,1,8,1], index: 6, kind: output, shape index: {1}]   ;;  %s3127_s7 = inlined_call_operand.vmem [shape: f32[2,1,8,1], index: 7, kind: output, shape index: {2}]  }
   0x1   :  { %s2372_s26 = smov 0  }
   0x2 LB: > { %s37_s27 = sadd.s32 1, %s2321_s25  ;;  %p2247_p0 = scmp.ge.s32.totalorder %s2325_s26, 1  ;;  %s2325_s26 = sphi %s2372_s26, %s18_s26   ;;  %s2321_s25 = sphi %s2370_s25, %s3132_s25   ;;  %s2317_s24 = sphi %s2368_s24, %s3131_s24  }
   0x3   : > { %p39_p1 = scmp.ge.s32.totalorder %s37_s27, 2  ;;  %p307_p2 = scmp.lt.s32.totalorder %s2325_s26, 3 }
   0x5   : > { %s3134_s27 = smov (%p39_p1, %s37_s27), 0  ;;  %p308_p3 = pnand %p2247_p0, %p307_p2 }
   0x6   : > { %p379_p4 = scmp.lt.s32.totalorder (!%p308_p3), %s2317_s24, 1  ;;  %v634_v0 = vlaneseq (!%p308_p3)  ;;  %v3128_v1 = vmov (!%p308_p3), 0   ;;  %v1802_v44 = vld [vmem:[%s3124_s4] sm:$0xff] (!%p308_p3)  ;;  %vm1812_vm0 = vcmask (!%p308_p3), 1041408   ;;  %vm1808_vm1 = vcmask (!%p308_p3), 31744  }
   0x7   : > { %311 = sbr.rel (%p308_p3) target bundleno = 963 (0x3c3), region = 40  ;;  %2301 = vset.pattern.permute.xlu1 (!%p308_p3), %v3128_v1  ;;  %2300 = vset.pattern.permute.xlu0 (!%p308_p3), %v3128_v1  ;;  %vm2018_vm2 = vcmask (!%p308_p3), 7168  }
   0x8   : > { %v2390_v2 = vshrl.u32 (!%p308_p3), %v634_v0, 7 }
   0xa   : > { %v652_v3 = vsub.s32 (!%p308_p3), 4, %v2390_v2  ;;  %v656_v4 = vsub.s32 (!%p308_p3), 5, %v2390_v2  ;;  %v660_v5 = vsub.s32 (!%p308_p3), 6, %v2390_v2  ;;  %v664_v6 = vsub.s32 (!%p308_p3), 7, %v2390_v2 }
   0xb   : > { %v636_v45 = vsub.s32 (!%p308_p3), 0, %v2390_v2  ;;  %v640_v46 = vsub.s32 (!%p308_p3), 1, %v2390_v2  ;;  %v644_v47 = vsub.s32 (!%p308_p3), 2, %v2390_v2  ;;  %v648_v48 = vsub.s32 (!%p308_p3), 3, %v2390_v2 }
   0xe   : > { %s3136_s24 = smov (!%p379_p4, %s2317_s24), 1 }
   0xf   : > { %s2268_s28 = sshll.u32 %s3136_s24, 8  ;;  %s2394_s29 = sshll.u32 %s3136_s24, 3 }
  0x10   : > { %s2399_s9 = scalar_lea.vmem %s3121_s1, %s2268_s28  ;;  %s385_s12 = scalar_lea.vmem %s3120_s0, %s2394_s29 }
  0x11   : > { %v443_v7 = vld [vmem:[%s2399_s9 + $0x10] sm:$0xff]  ;;  %v2410_v8 = vld [vmem:[%s385_s12] sm:$0xff]  ;;  %v444_v14 = vld [vmem:[%s2399_s9 + $0x18] sm:$0xff]  ;;  %s2269_s15 = sshll.u32 %s3136_s24, 2  ;;  %s2270_s21 = sshll.u32 %s3136_s24, 6 }
  0x12   : > { %v441_v9 = vld [vmem:[%s2399_s9] sm:$0xff]  ;;  %485 = vperm.xlu1 %2301, %v443_v7   ;;  %v2414_v10 = vrot.slane %v2410_v8, %v652_v3  ;;  %v2417_v11 = vrot.slane %v2410_v8, %v656_v4  ;;  %v2420_v12 = vrot.slane %v2410_v8, %v660_v5  ;;  %v2423_v13 = vrot.slane %v2410_v8, %v664_v6  ;;  %v442_v15 = vld [vmem:[%s2399_s9 + $0x8] sm:$0xff]  ;;  %v448_v18 = vld [vmem:[%s2399_s9 + $0x38] sm:$0xff]  ;;  %s2466_s18 = scalar_lea.vmem %s3122_s2, %s2269_s15  ;;  %s3093_s28 = scalar_lea.vmem %s3125_s5, %s2270_s21 }
  0x13   : > { %475 = vperm.xlu0 %2300, %v441_v9   ;;  %v446_v16 = vld [vmem:[%s2399_s9 + $0x28] sm:$0xff]  ;;  %v445_v17 = vld [vmem:[%s2399_s9 + $0x20] sm:$0xff]  ;;  %v447_v19 = vld [vmem:[%s2399_s9 + $0x30] sm:$0xff]  ;;  %v2472_v51 = vrot.slane %v2410_v8, %v636_v45  ;;  %v2475_v52 = vrot.slane %v2410_v8, %v640_v46  ;;  %v2478_v53 = vrot.slane %v2410_v8, %v644_v47  ;;  %v2481_v54 = vrot.slane %v2410_v8, %v648_v48  ;;  %s423_s8 = scalar_lea.vmem %s3126_s6, %s2394_s29  ;;  %s430_s11 = scalar_lea.vmem %s3127_s7, %s2394_s29 }
  0x14   : > { %v450_v20 = vld [vmem:[%s2399_s9 + $0x48] sm:$0xff]  ;;  %v449_v21 = vld [vmem:[%s2399_s9 + $0x40] sm:$0xff]  ;;  %v452_v22 = vld [vmem:[%s2399_s9 + $0x58] sm:$0xff] }
  0x15   : > { %v451_v23 = vld [vmem:[%s2399_s9 + $0x50] sm:$0xff]  ;;  %v454_v24 = vld [vmem:[%s2399_s9 + $0x68] sm:$0xff]  ;;  %v453_v25 = vld [vmem:[%s2399_s9 + $0x60] sm:$0xff] }
  0x16   : > { %490 = vperm.xlu1 %2301, %v444_v14   ;;  %v456_v26 = vld [vmem:[%s2399_s9 + $0x78] sm:$0xff]  ;;  %v455_v27 = vld [vmem:[%s2399_s9 + $0x70] sm:$0xff]  ;;  %v458_v28 = vld [vmem:[%s2399_s9 + $0x88] sm:$0xff] }
  0x17   : > { %480 = vperm.xlu0 %2300, %v442_v15   ;;  %v457_v29 = vld [vmem:[%s2399_s9 + $0x80] sm:$0xff]  ;;  %v460_v30 = vld [vmem:[%s2399_s9 + $0x98] sm:$0xff]  ;;  %v459_v31 = vld [vmem:[%s2399_s9 + $0x90] sm:$0xff] }
  0x18   : > { %v462_v32 = vld [vmem:[%s2399_s9 + $0xa8] sm:$0xff]  ;;  %v461_v33 = vld [vmem:[%s2399_s9 + $0xa0] sm:$0xff]  ;;  %v464_v34 = vld [vmem:[%s2399_s9 + $0xb8] sm:$0xff] }
  0x19   : > { %v463_v35 = vld [vmem:[%s2399_s9 + $0xb0] sm:$0xff]  ;;  %v466_v36 = vld [vmem:[%s2399_s9 + $0xc8] sm:$0xff]  ;;  %v465_v37 = vld [vmem:[%s2399_s9 + $0xc0] sm:$0xff] }
  0x1a   : > { %500 = vperm.xlu1 %2301, %v446_v16   ;;  %v468_v38 = vld [vmem:[%s2399_s9 + $0xd8] sm:$0xff]  ;;  %v467_v39 = vld [vmem:[%s2399_s9 + $0xd0] sm:$0xff]  ;;  %v470_v40 = vld [vmem:[%s2399_s9 + $0xe8] sm:$0xff] }
  0x1b   : > { %495 = vperm.xlu0 %2300, %v445_v17   ;;  %v469_v41 = vld [vmem:[%s2399_s9 + $0xe0] sm:$0xff]  ;;  %v472_v42 = vld [vmem:[%s2399_s9 + $0xf8] sm:$0xff]  ;;  %v471_v43 = vld [vmem:[%s2399_s9 + $0xf0] sm:$0xff] }
  0x1c   : > { %v2257_v49 = vld.sshfl [vmem:[%s2466_s18] sm:$0x33 pattern:$0x76325410] }
  0x1d   : > { %v2469_v50 = vcombine.high %v2257_v49, %v2257_v49 }
  0x1e   : > { %510 = vperm.xlu1 %2301, %v448_v18  }
  0x1f   : > { %505 = vperm.xlu0 %2300, %v447_v19   ;;  %1618 = vmatprep.mubr.bf16.mxu0 %v2469_v50 }
  0x20   : > { %1659 = vmatprep.mubr.bf16.mxu1 %v2469_v50 }
  0x22   : > { %520 = vperm.xlu1 %2301, %v450_v20  }
  0x23   : > { %515 = vperm.xlu0 %2300, %v449_v21  }
  0x26   : > { %530 = vperm.xlu1 %2301, %v452_v22  }
  0x27   : > { %525 = vperm.xlu0 %2300, %v451_v23  }
  0x2a   : > { %540 = vperm.xlu1 %2301, %v454_v24  }
  0x2b   : > { %535 = vperm.xlu0 %2300, %v453_v25  }
  0x2e   : > { %550 = vperm.xlu1 %2301, %v456_v26  }
  0x2f   : > { %545 = vperm.xlu0 %2300, %v455_v27  }
  0x32   : > { %560 = vperm.xlu1 %2301, %v458_v28  }
  0x33   : > { %555 = vperm.xlu0 %2300, %v457_v29  }
  0x36   : > { %570 = vperm.xlu1 %2301, %v460_v30  }
  0x37   : > { %565 = vperm.xlu0 %2300, %v459_v31  }
  0x3a   : > { %580 = vperm.xlu1 %2301, %v462_v32  }
  0x3b   : > { %575 = vperm.xlu0 %2300, %v461_v33  }
  0x3e   : > { %590 = vperm.xlu1 %2301, %v464_v34  }
  0x3f   : > { %585 = vperm.xlu0 %2300, %v463_v35  }
  0x42   : > { %600 = vperm.xlu1 %2301, %v466_v36  }
  0x43   : > { %595 = vperm.xlu0 %2300, %v465_v37  }
  0x46   : > { %610 = vperm.xlu1 %2301, %v468_v38  }
  0x47   : > { %605 = vperm.xlu0 %2300, %v467_v39  }
  0x4a   : > { %620 = vperm.xlu1 %2301, %v470_v40  }
  0x4b   : > { %615 = vperm.xlu0 %2300, %v469_v41  }
  0x4e   : > { %630 = vperm.xlu1 %2301, %v472_v42  }
  0x4f   : > { %625 = vperm.xlu0 %2300, %v471_v43  }
  0x53   : > { %1805 = vperm.xlu0 %2300, %v1802_v44  }
  0x91   : > { %v2485_v55 = vpop.permute.xlu1 %485 }
  0x92   : > { %v2487_v56 = vpop.permute.xlu0 %475  ;;  %v691_v57 = vadd.f32 %v2475_v52, %v2485_v55  ;;  %v693_v58 = vadd.f32 %v2481_v54, %v2485_v55  ;;  %v690_v59 = vadd.f32 %v2472_v51, %v2485_v55  ;;  %v692_v60 = vadd.f32 %v2478_v53, %v2485_v55 }
  0x93   : > { %v675_v61 = vadd.f32 %v2475_v52, %v2487_v56  ;;  %v677_v62 = vadd.f32 %v2481_v54, %v2487_v56  ;;  %v674_v63 = vadd.f32 %v2472_v51, %v2487_v56  ;;  %v676_v0 = vadd.f32 %v2478_v53, %v2487_v56 }
  0x94   : > { %v947_v2 = vmax.f32 %v691_v57, 0.0  ;;  %v949_v3 = vmax.f32 %v693_v58, 0.0  ;;  %v946_v4 = vmax.f32 %v690_v59, 0.0  ;;  %v948_v5 = vmax.f32 %v692_v60, 0.0 }
  0x95   : > { %v2505_v6 = vpop.permute.xlu1 %490  ;;  %v931_v7 = vmax.f32 %v675_v61, 0.0  ;;  %v933_v8 = vmax.f32 %v677_v62, 0.0  ;;  %v930_v9 = vmax.f32 %v674_v63, 0.0  ;;  %v932_v14 = vmax.f32 %v676_v0, 0.0 }
  0x96   : > { %v2507_v15 = vpop.permute.xlu0 %480  ;;  %v699_v16 = vadd.f32 %v2475_v52, %v2505_v6  ;;  %v1203_v17 = vmul.f32 0.00390625, %v947_v2  ;;  %v701_v18 = vadd.f32 %v2481_v54, %v2505_v6  ;;  %v1205_v19 = vmul.f32 0.00390625, %v949_v3 }
  0x97   : > { %v683_v20 = vadd.f32 %v2475_v52, %v2507_v15  ;;  %v1187_v21 = vmul.f32 0.00390625, %v931_v7  ;;  %v685_v22 = vadd.f32 %v2481_v54, %v2507_v15  ;;  %v1189_v23 = vmul.f32 0.00390625, %v933_v8 }
  0x98   : > { %v682_v24 = vadd.f32 %v2472_v51, %v2507_v15  ;;  %v1186_v25 = vmul.f32 0.00390625, %v930_v9  ;;  %v684_v26 = vadd.f32 %v2478_v53, %v2507_v15  ;;  %v1188_v27 = vmul.f32 0.00390625, %v932_v14 }
  0x99   : > { %v939_v28 = vmax.f32 %v683_v20, 0.0  ;;  %v941_v29 = vmax.f32 %v685_v22, 0.0  ;;  %v955_v30 = vmax.f32 %v699_v16, 0.0  ;;  %v957_v31 = vmax.f32 %v701_v18, 0.0  ;;  %v2523_v40 = vpop.permute.xlu1 %500 }
  0x9a   : > { %v938_v32 = vmax.f32 %v682_v24, 0.0  ;;  %v940_v33 = vmax.f32 %v684_v26, 0.0  ;;  %v698_v34 = vadd.f32 %v2472_v51, %v2505_v6  ;;  %v1202_v35 = vmul.f32 0.00390625, %v946_v4  ;;  %v2525_v41 = vpop.permute.xlu0 %495 }
  0x9b   : > { %v1195_v36 = vmul.f32 0.00390625, %v939_v28  ;;  %v1197_v37 = vmul.f32 0.00390625, %v941_v29  ;;  %v1211_v38 = vmul.f32 0.00390625, %v955_v30  ;;  %v1213_v39 = vmul.f32 0.00390625, %v957_v31 }
  0x9c   : > { %v1194_v42 = vmul.f32 0.00390625, %v938_v32  ;;  %v1196_v43 = vmul.f32 0.00390625, %v940_v33  ;;  %v954_v44 = vmax.f32 %v698_v34, 0.0  ;;  %v700_v45 = vadd.f32 %v2478_v53, %v2505_v6 }
  0x9d   : > { %v1443_v46 = vpack.c.bf16 %v1195_v36, %v1187_v21  ;;  %v1445_v47 = vpack.c.bf16 %v1197_v37, %v1189_v23  ;;  %v1451_v48 = vpack.c.bf16 %v1211_v38, %v1203_v17  ;;  %v1453_v49 = vpack.c.bf16 %v1213_v39, %v1205_v19  ;;  %v2541_v16 = vpop.permute.xlu1 %510 }
  0x9e   : > { %v1442_v57 = vpack.c.bf16 %v1194_v42, %v1186_v25  ;;  %v1444_v58 = vpack.c.bf16 %v1196_v43, %v1188_v27  ;;  %v1210_v59 = vmul.f32 0.00390625, %v954_v44  ;;  %v956_v60 = vmax.f32 %v700_v45, 0.0  ;;  %v2543_v17 = vpop.permute.xlu0 %505 }
  0x9f   : > { %1586 = vmatprep.subr.bf16.mxu0 %v1443_v46  ;;  %1627 = vmatprep.subr.bf16.mxu1 %v1445_v47  ;;  %v1204_v61 = vmul.f32 0.00390625, %v948_v5  ;;  %v707_v62 = vadd.f32 %v2475_v52, %v2525_v41  ;;  %v715_v63 = vadd.f32 %v2475_v52, %v2523_v40  ;;  %v709_v0 = vadd.f32 %v2481_v54, %v2525_v41 }
  0xa0   : > { %1587 = vmatpush1.bf16.msra.mxu0 %v1442_v57  ;;  %1628 = vmatpush1.bf16.msra.mxu1 %v1444_v58  ;;  %v1450_v2 = vpack.c.bf16 %v1210_v59, %v1202_v35  ;;  %v1212_v3 = vmul.f32 0.00390625, %v956_v60  ;;  %v717_v4 = vadd.f32 %v2481_v54, %v2523_v40  ;;  %v706_v7 = vadd.f32 %v2472_v51, %v2525_v41 }
  0xa1   : > { %1588 = vmatprep.subr.bf16.mxu0 %v1451_v48  ;;  %1629 = vmatprep.subr.bf16.mxu1 %v1453_v49  ;;  %v963_v5 = vmax.f32 %v707_v62, 0.0  ;;  %v971_v8 = vmax.f32 %v715_v63, 0.0  ;;  %v965_v9 = vmax.f32 %v709_v0, 0.0  ;;  %v714_v14 = vadd.f32 %v2472_v51, %v2523_v40  ;;  %v2561_v48 = vpop.permute.xlu1 %520 }
  0xa2   : > { %v1452_v18 = vpack.c.bf16 %v1212_v3, %v1204_v61  ;;  %v973_v19 = vmax.f32 %v717_v4, 0.0  ;;  %v962_v20 = vmax.f32 %v706_v7, 0.0  ;;  %v708_v21 = vadd.f32 %v2478_v53, %v2525_v41  ;;  %v2563_v49 = vpop.permute.xlu0 %515 }
  0xa3   : > { %v1219_v22 = vmul.f32 0.00390625, %v963_v5  ;;  %v1227_v23 = vmul.f32 0.00390625, %v971_v8  ;;  %v1221_v24 = vmul.f32 0.00390625, %v965_v9  ;;  %v970_v25 = vmax.f32 %v714_v14, 0.0 }
  0xa4   : > { %1589 = vmatpush1.bf16.msra.mxu0 %v1450_v2  ;;  %1630 = vmatpush1.bf16.msra.mxu1 %v1452_v18  ;;  %v1229_v26 = vmul.f32 0.00390625, %v973_v19  ;;  %v1218_v27 = vmul.f32 0.00390625, %v962_v20  ;;  %v716_v28 = vadd.f32 %v2478_v53, %v2523_v40  ;;  %v964_v29 = vmax.f32 %v708_v21, 0.0 }
  0xa5   : > { %v1459_v30 = vpack.c.bf16 %v1227_v23, %v1219_v22  ;;  %v1226_v31 = vmul.f32 0.00390625, %v970_v25  ;;  %v723_v32 = vadd.f32 %v2475_v52, %v2543_v17  ;;  %v731_v33 = vadd.f32 %v2475_v52, %v2541_v16 }
  0xa6   : > { %v1461_v34 = vpack.c.bf16 %v1229_v26, %v1221_v24  ;;  %v972_v35 = vmax.f32 %v716_v28, 0.0  ;;  %v1220_v36 = vmul.f32 0.00390625, %v964_v29  ;;  %v725_v37 = vadd.f32 %v2481_v54, %v2543_v17 }
  0xa7   : > { %1590 = vmatprep.subr.bf16.mxu0 %v1459_v30  ;;  %v1458_v38 = vpack.c.bf16 %v1226_v31, %v1218_v27  ;;  %v979_v39 = vmax.f32 %v723_v32, 0.0  ;;  %v987_v42 = vmax.f32 %v731_v33, 0.0  ;;  %v733_v43 = vadd.f32 %v2481_v54, %v2541_v16  ;;  %v2581_v30 = vpop.permute.xlu1 %530  ;;  %v2583_v31 = vpop.permute.xlu0 %525 }
  0xa8   : > { %1631 = vmatprep.subr.bf16.mxu1 %v1461_v34  ;;  %v1228_v44 = vmul.f32 0.00390625, %v972_v35  ;;  %v981_v45 = vmax.f32 %v725_v37, 0.0  ;;  %v722_v46 = vadd.f32 %v2472_v51, %v2543_v17  ;;  %v730_v47 = vadd.f32 %v2472_v51, %v2541_v16 }
  0xa9   : > { %1591 = vmatpush1.bf16.msra.mxu0 %v1458_v38  ;;  %v1235_v57 = vmul.f32 0.00390625, %v979_v39  ;;  %v1243_v58 = vmul.f32 0.00390625, %v987_v42  ;;  %v989_v59 = vmax.f32 %v733_v43, 0.0  ;;  %v724_v60 = vadd.f32 %v2478_v53, %v2543_v17 }
  0xaa   : > { %v1460_v61 = vpack.c.bf16 %v1228_v44, %v1220_v36  ;;  %v1237_v62 = vmul.f32 0.00390625, %v981_v45  ;;  %v978_v63 = vmax.f32 %v722_v46, 0.0  ;;  %v986_v0 = vmax.f32 %v730_v47, 0.0 }
  0xab   : > { %v1467_v2 = vpack.c.bf16 %v1243_v58, %v1235_v57  ;;  %v1245_v3 = vmul.f32 0.00390625, %v989_v59  ;;  %v732_v4 = vadd.f32 %v2478_v53, %v2541_v16  ;;  %v980_v7 = vmax.f32 %v724_v60, 0.0 }
  0xac   : > { %1632 = vmatpush1.bf16.msra.mxu1 %v1460_v61  ;;  %v1234_v5 = vmul.f32 0.00390625, %v978_v63  ;;  %v1242_v8 = vmul.f32 0.00390625, %v986_v0  ;;  %v739_v9 = vadd.f32 %v2475_v52, %v2563_v49  ;;  %v747_v14 = vadd.f32 %v2475_v52, %v2561_v48 }
  0xad   : > { %1592 = vmatprep.subr.bf16.mxu0 %v1467_v2  ;;  %v1469_v18 = vpack.c.bf16 %v1245_v3, %v1237_v62  ;;  %v988_v19 = vmax.f32 %v732_v4, 0.0  ;;  %v1236_v20 = vmul.f32 0.00390625, %v980_v7  ;;  %v741_v21 = vadd.f32 %v2481_v54, %v2563_v49 }
  0xae   : > { %v1466_v22 = vpack.c.bf16 %v1242_v8, %v1234_v5  ;;  %v995_v23 = vmax.f32 %v739_v9, 0.0  ;;  %v1003_v24 = vmax.f32 %v747_v14, 0.0  ;;  %v749_v25 = vadd.f32 %v2481_v54, %v2561_v48  ;;  %v2601_v9 = vpop.permute.xlu1 %540  ;;  %v2603_v14 = vpop.permute.xlu0 %535 }
  0xaf   : > { %1633 = vmatprep.subr.bf16.mxu1 %v1469_v18  ;;  %v1244_v26 = vmul.f32 0.00390625, %v988_v19  ;;  %v997_v27 = vmax.f32 %v741_v21, 0.0  ;;  %v738_v28 = vadd.f32 %v2472_v51, %v2563_v49  ;;  %v746_v29 = vadd.f32 %v2472_v51, %v2561_v48 }
  0xb0   : > { %1593 = vmatpush1.bf16.msra.mxu0 %v1466_v22  ;;  %v1251_v32 = vmul.f32 0.00390625, %v995_v23  ;;  %v1259_v33 = vmul.f32 0.00390625, %v1003_v24  ;;  %v1005_v34 = vmax.f32 %v749_v25, 0.0  ;;  %v740_v35 = vadd.f32 %v2478_v53, %v2563_v49 }
  0xb1   : > { %v1468_v36 = vpack.c.bf16 %v1244_v26, %v1236_v20  ;;  %v1253_v37 = vmul.f32 0.00390625, %v997_v27  ;;  %v994_v38 = vmax.f32 %v738_v28, 0.0  ;;  %v1002_v39 = vmax.f32 %v746_v29, 0.0 }
  0xb2   : > { %v1475_v42 = vpack.c.bf16 %v1259_v33, %v1251_v32  ;;  %v1261_v43 = vmul.f32 0.00390625, %v1005_v34  ;;  %v748_v44 = vadd.f32 %v2478_v53, %v2561_v48  ;;  %v996_v45 = vmax.f32 %v740_v35, 0.0 }
  0xb3   : > { %1634 = vmatpush1.bf16.msra.mxu1 %v1468_v36  ;;  %v1250_v46 = vmul.f32 0.00390625, %v994_v38  ;;  %v1258_v47 = vmul.f32 0.00390625, %v1002_v39  ;;  %v755_v57 = vadd.f32 %v2475_v52, %v2583_v31  ;;  %v763_v58 = vadd.f32 %v2475_v52, %v2581_v30 }
  0xb4   : > { %1594 = vmatprep.subr.bf16.mxu0 %v1475_v42  ;;  %v1477_v59 = vpack.c.bf16 %v1261_v43, %v1253_v37  ;;  %v1004_v60 = vmax.f32 %v748_v44, 0.0  ;;  %v1252_v61 = vmul.f32 0.00390625, %v996_v45  ;;  %v757_v62 = vadd.f32 %v2481_v54, %v2583_v31 }
  0xb5   : > { %v1474_v63 = vpack.c.bf16 %v1258_v47, %v1250_v46  ;;  %v1011_v0 = vmax.f32 %v755_v57, 0.0  ;;  %v1019_v2 = vmax.f32 %v763_v58, 0.0  ;;  %v765_v3 = vadd.f32 %v2481_v54, %v2581_v30 }
  0xb6   : > { %1635 = vmatprep.subr.bf16.mxu1 %v1477_v59  ;;  %v1260_v4 = vmul.f32 0.00390625, %v1004_v60  ;;  %v1013_v7 = vmax.f32 %v757_v62, 0.0  ;;  %v754_v5 = vadd.f32 %v2472_v51, %v2583_v31  ;;  %v762_v8 = vadd.f32 %v2472_v51, %v2581_v30  ;;  %v2621_v59 = vpop.permute.xlu1 %550  ;;  %v2623_v60 = vpop.permute.xlu0 %545 }
  0xb7   : > { %1595 = vmatpush1.bf16.msra.mxu0 %v1474_v63  ;;  %v1267_v18 = vmul.f32 0.00390625, %v1011_v0  ;;  %v1275_v19 = vmul.f32 0.00390625, %v1019_v2  ;;  %v1021_v20 = vmax.f32 %v765_v3, 0.0  ;;  %v756_v21 = vadd.f32 %v2478_v53, %v2583_v31 }
  0xb8   : > { %v1476_v22 = vpack.c.bf16 %v1260_v4, %v1252_v61  ;;  %v1269_v23 = vmul.f32 0.00390625, %v1013_v7  ;;  %v1010_v24 = vmax.f32 %v754_v5, 0.0  ;;  %v1018_v25 = vmax.f32 %v762_v8, 0.0 }
  0xb9   : > { %v1483_v26 = vpack.c.bf16 %v1275_v19, %v1267_v18  ;;  %v1277_v27 = vmul.f32 0.00390625, %v1021_v20  ;;  %v764_v28 = vadd.f32 %v2478_v53, %v2581_v30  ;;  %v1012_v29 = vmax.f32 %v756_v21, 0.0 }
  0xba   : > { %1636 = vmatpush1.bf16.msra.mxu1 %v1476_v22  ;;  %v1266_v32 = vmul.f32 0.00390625, %v1010_v24  ;;  %v1274_v33 = vmul.f32 0.00390625, %v1018_v25  ;;  %v771_v34 = vadd.f32 %v2475_v52, %v2603_v14  ;;  %v779_v35 = vadd.f32 %v2475_v52, %v2601_v9 }
  0xbb   : > { %1596 = vmatprep.subr.bf16.mxu0 %v1483_v26  ;;  %v1485_v36 = vpack.c.bf16 %v1277_v27, %v1269_v23  ;;  %v1020_v37 = vmax.f32 %v764_v28, 0.0  ;;  %v1268_v38 = vmul.f32 0.00390625, %v1012_v29  ;;  %v773_v39 = vadd.f32 %v2481_v54, %v2603_v14 }
  0xbc   : > { %v1482_v42 = vpack.c.bf16 %v1274_v33, %v1266_v32  ;;  %v1027_v43 = vmax.f32 %v771_v34, 0.0  ;;  %v1035_v44 = vmax.f32 %v779_v35, 0.0  ;;  %v781_v45 = vadd.f32 %v2481_v54, %v2601_v9 }
  0xbd   : > { %1637 = vmatprep.subr.bf16.mxu1 %v1485_v36  ;;  %v1276_v46 = vmul.f32 0.00390625, %v1020_v37  ;;  %v1029_v47 = vmax.f32 %v773_v39, 0.0  ;;  %v770_v57 = vadd.f32 %v2472_v51, %v2603_v14  ;;  %v778_v58 = vadd.f32 %v2472_v51, %v2601_v9  ;;  %v2643_v39 = vpop.permute.xlu0 %555 }
  0xbe   : > { %1597 = vmatpush1.bf16.msra.mxu0 %v1482_v42  ;;  %v1283_v61 = vmul.f32 0.00390625, %v1027_v43  ;;  %v1291_v62 = vmul.f32 0.00390625, %v1035_v44  ;;  %v1037_v63 = vmax.f32 %v781_v45, 0.0  ;;  %v772_v0 = vadd.f32 %v2478_v53, %v2603_v14 }
  0xbf   : > { %v1484_v2 = vpack.c.bf16 %v1276_v46, %v1268_v38  ;;  %v1285_v3 = vmul.f32 0.00390625, %v1029_v47  ;;  %v1026_v4 = vmax.f32 %v770_v57, 0.0  ;;  %v1034_v7 = vmax.f32 %v778_v58, 0.0  ;;  %v2641_v38 = vpop.permute.xlu1 %560 }
  0xc0   : > { %v1491_v5 = vpack.c.bf16 %v1291_v62, %v1283_v61  ;;  %v1293_v8 = vmul.f32 0.00390625, %v1037_v63  ;;  %v780_v18 = vadd.f32 %v2478_v53, %v2601_v9  ;;  %v1028_v19 = vmax.f32 %v772_v0, 0.0 }
  0xc1   : > { %1638 = vmatpush1.bf16.msra.mxu1 %v1484_v2  ;;  %v1282_v20 = vmul.f32 0.00390625, %v1026_v4  ;;  %v1290_v21 = vmul.f32 0.00390625, %v1034_v7  ;;  %v787_v22 = vadd.f32 %v2475_v52, %v2623_v60  ;;  %v795_v23 = vadd.f32 %v2475_v52, %v2621_v59 }
  0xc2   : > { %1598 = vmatprep.subr.bf16.mxu0 %v1491_v5  ;;  %v1493_v24 = vpack.c.bf16 %v1293_v8, %v1285_v3  ;;  %v1036_v25 = vmax.f32 %v780_v18, 0.0  ;;  %v1284_v26 = vmul.f32 0.00390625, %v1028_v19  ;;  %v789_v27 = vadd.f32 %v2481_v54, %v2623_v60 }
  0xc3   : > { %v1490_v28 = vpack.c.bf16 %v1290_v21, %v1282_v20  ;;  %v1043_v29 = vmax.f32 %v787_v22, 0.0  ;;  %v1051_v32 = vmax.f32 %v795_v23, 0.0  ;;  %v797_v33 = vadd.f32 %v2481_v54, %v2621_v59 }
  0xc4   : > { %1639 = vmatprep.subr.bf16.mxu1 %v1493_v24  ;;  %v1292_v34 = vmul.f32 0.00390625, %v1036_v25  ;;  %v1045_v35 = vmax.f32 %v789_v27, 0.0  ;;  %v786_v36 = vadd.f32 %v2472_v51, %v2623_v60  ;;  %v794_v37 = vadd.f32 %v2472_v51, %v2621_v59 }
  0xc5   : > { %1599 = vmatpush1.bf16.msra.mxu0 %v1490_v28  ;;  %v1299_v42 = vmul.f32 0.00390625, %v1043_v29  ;;  %v1307_v43 = vmul.f32 0.00390625, %v1051_v32  ;;  %v1053_v44 = vmax.f32 %v797_v33, 0.0  ;;  %v788_v45 = vadd.f32 %v2478_v53, %v2623_v60  ;;  %v2661_v28 = vpop.permute.xlu1 %570  ;;  %v2663_v29 = vpop.permute.xlu0 %565 }
  0xc6   : > { %v1492_v46 = vpack.c.bf16 %v1292_v34, %v1284_v26  ;;  %v1301_v47 = vmul.f32 0.00390625, %v1045_v35  ;;  %v1042_v57 = vmax.f32 %v786_v36, 0.0  ;;  %v1050_v58 = vmax.f32 %v794_v37, 0.0 }
  0xc7   : > { %v1499_v61 = vpack.c.bf16 %v1307_v43, %v1299_v42  ;;  %v1309_v62 = vmul.f32 0.00390625, %v1053_v44  ;;  %v796_v63 = vadd.f32 %v2478_v53, %v2621_v59  ;;  %v1044_v0 = vmax.f32 %v788_v45, 0.0 }
  0xc8   : > { %1640 = vmatpush1.bf16.msra.mxu1 %v1492_v46  ;;  %v1298_v2 = vmul.f32 0.00390625, %v1042_v57  ;;  %v1306_v3 = vmul.f32 0.00390625, %v1050_v58  ;;  %v803_v4 = vadd.f32 %v2475_v52, %v2643_v39  ;;  %v811_v7 = vadd.f32 %v2475_v52, %v2641_v38 }
  0xc9   : > { %1600 = vmatprep.subr.bf16.mxu0 %v1499_v61  ;;  %v1501_v5 = vpack.c.bf16 %v1309_v62, %v1301_v47  ;;  %v1052_v8 = vmax.f32 %v796_v63, 0.0  ;;  %v1300_v18 = vmul.f32 0.00390625, %v1044_v0  ;;  %v805_v19 = vadd.f32 %v2481_v54, %v2643_v39 }
  0xca   : > { %v1498_v20 = vpack.c.bf16 %v1306_v3, %v1298_v2  ;;  %v1059_v21 = vmax.f32 %v803_v4, 0.0  ;;  %v1067_v22 = vmax.f32 %v811_v7, 0.0  ;;  %v813_v23 = vadd.f32 %v2481_v54, %v2641_v38 }
  0xcb   : > { %1641 = vmatprep.subr.bf16.mxu1 %v1501_v5  ;;  %v1308_v24 = vmul.f32 0.00390625, %v1052_v8  ;;  %v1061_v25 = vmax.f32 %v805_v19, 0.0  ;;  %v802_v26 = vadd.f32 %v2472_v51, %v2643_v39  ;;  %v810_v27 = vadd.f32 %v2472_v51, %v2641_v38 }
  0xcc   : > { %1601 = vmatpush1.bf16.msra.mxu0 %v1498_v20  ;;  %v1315_v32 = vmul.f32 0.00390625, %v1059_v21  ;;  %v1323_v33 = vmul.f32 0.00390625, %v1067_v22  ;;  %v1069_v34 = vmax.f32 %v813_v23, 0.0  ;;  %v804_v35 = vadd.f32 %v2478_v53, %v2643_v39  ;;  %v2681_v22 = vpop.permute.xlu1 %580  ;;  %v2683_v23 = vpop.permute.xlu0 %575 }
  0xcd   : > { %v1500_v36 = vpack.c.bf16 %v1308_v24, %v1300_v18  ;;  %v1317_v37 = vmul.f32 0.00390625, %v1061_v25  ;;  %v1058_v42 = vmax.f32 %v802_v26, 0.0  ;;  %v1066_v43 = vmax.f32 %v810_v27, 0.0 }
  0xce   : > { %v1507_v44 = vpack.c.bf16 %v1323_v33, %v1315_v32  ;;  %v1325_v45 = vmul.f32 0.00390625, %v1069_v34  ;;  %v812_v46 = vadd.f32 %v2478_v53, %v2641_v38  ;;  %v1060_v47 = vmax.f32 %v804_v35, 0.0 }
  0xcf   : > { %1642 = vmatpush1.bf16.msra.mxu1 %v1500_v36  ;;  %v1314_v57 = vmul.f32 0.00390625, %v1058_v42  ;;  %v1322_v58 = vmul.f32 0.00390625, %v1066_v43  ;;  %v819_v61 = vadd.f32 %v2475_v52, %v2663_v29  ;;  %v827_v62 = vadd.f32 %v2475_v52, %v2661_v28 }
  0xd0   : > { %1602 = vmatprep.subr.bf16.mxu0 %v1507_v44  ;;  %v1509_v63 = vpack.c.bf16 %v1325_v45, %v1317_v37  ;;  %v1068_v0 = vmax.f32 %v812_v46, 0.0  ;;  %v1316_v2 = vmul.f32 0.00390625, %v1060_v47  ;;  %v821_v3 = vadd.f32 %v2481_v54, %v2663_v29 }
  0xd1   : > { %v1506_v4 = vpack.c.bf16 %v1322_v58, %v1314_v57  ;;  %v1075_v7 = vmax.f32 %v819_v61, 0.0  ;;  %v1083_v5 = vmax.f32 %v827_v62, 0.0  ;;  %v829_v8 = vadd.f32 %v2481_v54, %v2661_v28 }
  0xd2   : > { %1643 = vmatprep.subr.bf16.mxu1 %v1509_v63  ;;  %v1324_v18 = vmul.f32 0.00390625, %v1068_v0  ;;  %v1077_v19 = vmax.f32 %v821_v3, 0.0  ;;  %v818_v20 = vadd.f32 %v2472_v51, %v2663_v29  ;;  %v826_v21 = vadd.f32 %v2472_v51, %v2661_v28 }
  0xd3   : > { %1603 = vmatpush1.bf16.msra.mxu0 %v1506_v4  ;;  %v1331_v24 = vmul.f32 0.00390625, %v1075_v7  ;;  %v1339_v25 = vmul.f32 0.00390625, %v1083_v5  ;;  %v1085_v26 = vmax.f32 %v829_v8, 0.0  ;;  %v820_v27 = vadd.f32 %v2478_v53, %v2663_v29 }
  0xd4   : > { %v1508_v32 = vpack.c.bf16 %v1324_v18, %v1316_v2  ;;  %v1333_v33 = vmul.f32 0.00390625, %v1077_v19  ;;  %v1074_v34 = vmax.f32 %v818_v20, 0.0  ;;  %v1082_v35 = vmax.f32 %v826_v21, 0.0  ;;  %v2701_v18 = vpop.permute.xlu1 %590  ;;  %v2703_v19 = vpop.permute.xlu0 %585 }
  0xd5   : > { %v1515_v36 = vpack.c.bf16 %v1339_v25, %v1331_v24  ;;  %v1341_v37 = vmul.f32 0.00390625, %v1085_v26  ;;  %v828_v42 = vadd.f32 %v2478_v53, %v2661_v28  ;;  %v1076_v43 = vmax.f32 %v820_v27, 0.0 }
  0xd6   : > { %1644 = vmatpush1.bf16.msra.mxu1 %v1508_v32  ;;  %v1330_v44 = vmul.f32 0.00390625, %v1074_v34  ;;  %v1338_v45 = vmul.f32 0.00390625, %v1082_v35  ;;  %v835_v46 = vadd.f32 %v2475_v52, %v2683_v23  ;;  %v843_v47 = vadd.f32 %v2475_v52, %v2681_v22 }
  0xd7   : > { %1604 = vmatprep.subr.bf16.mxu0 %v1515_v36  ;;  %v1517_v57 = vpack.c.bf16 %v1341_v37, %v1333_v33  ;;  %v1084_v58 = vmax.f32 %v828_v42, 0.0  ;;  %v1332_v61 = vmul.f32 0.00390625, %v1076_v43  ;;  %v837_v62 = vadd.f32 %v2481_v54, %v2683_v23 }
  0xd8   : > { %v1514_v63 = vpack.c.bf16 %v1338_v45, %v1330_v44  ;;  %v1091_v0 = vmax.f32 %v835_v46, 0.0  ;;  %v1099_v2 = vmax.f32 %v843_v47, 0.0  ;;  %v845_v3 = vadd.f32 %v2481_v54, %v2681_v22 }
  0xd9   : > { %1645 = vmatprep.subr.bf16.mxu1 %v1517_v57  ;;  %v1340_v4 = vmul.f32 0.00390625, %v1084_v58  ;;  %v1093_v7 = vmax.f32 %v837_v62, 0.0  ;;  %v834_v5 = vadd.f32 %v2472_v51, %v2683_v23  ;;  %v842_v8 = vadd.f32 %v2472_v51, %v2681_v22 }
  0xda   : > { %1605 = vmatpush1.bf16.msra.mxu0 %v1514_v63  ;;  %v1347_v20 = vmul.f32 0.00390625, %v1091_v0  ;;  %v1355_v21 = vmul.f32 0.00390625, %v1099_v2  ;;  %v1101_v24 = vmax.f32 %v845_v3, 0.0  ;;  %v836_v25 = vadd.f32 %v2478_v53, %v2683_v23 }
  0xdb   : > { %v1516_v26 = vpack.c.bf16 %v1340_v4, %v1332_v61  ;;  %v1349_v27 = vmul.f32 0.00390625, %v1093_v7  ;;  %v1090_v32 = vmax.f32 %v834_v5, 0.0  ;;  %v1098_v33 = vmax.f32 %v842_v8, 0.0  ;;  %v2721_v5 = vpop.permute.xlu1 %600  ;;  %v2723_v8 = vpop.permute.xlu0 %595 }
  0xdc   : > { %v1523_v34 = vpack.c.bf16 %v1355_v21, %v1347_v20  ;;  %v1357_v35 = vmul.f32 0.00390625, %v1101_v24  ;;  %v844_v36 = vadd.f32 %v2478_v53, %v2681_v22  ;;  %v1092_v37 = vmax.f32 %v836_v25, 0.0 }
  0xdd   : > { %1646 = vmatpush1.bf16.msra.mxu1 %v1516_v26  ;;  %v1346_v42 = vmul.f32 0.00390625, %v1090_v32  ;;  %v1354_v43 = vmul.f32 0.00390625, %v1098_v33  ;;  %v851_v44 = vadd.f32 %v2475_v52, %v2703_v19  ;;  %v859_v45 = vadd.f32 %v2475_v52, %v2701_v18 }
  0xde   : > { %1606 = vmatprep.subr.bf16.mxu0 %v1523_v34  ;;  %v1525_v46 = vpack.c.bf16 %v1357_v35, %v1349_v27  ;;  %v1100_v47 = vmax.f32 %v844_v36, 0.0  ;;  %v1348_v57 = vmul.f32 0.00390625, %v1092_v37  ;;  %v853_v58 = vadd.f32 %v2481_v54, %v2703_v19 }
  0xdf   : > { %v1522_v61 = vpack.c.bf16 %v1354_v43, %v1346_v42  ;;  %v1107_v62 = vmax.f32 %v851_v44, 0.0  ;;  %v1115_v63 = vmax.f32 %v859_v45, 0.0  ;;  %v861_v0 = vadd.f32 %v2481_v54, %v2701_v18 }
  0xe0   : > { %1647 = vmatprep.subr.bf16.mxu1 %v1525_v46  ;;  %v1356_v2 = vmul.f32 0.00390625, %v1100_v47  ;;  %v1109_v3 = vmax.f32 %v853_v58, 0.0  ;;  %v850_v4 = vadd.f32 %v2472_v51, %v2703_v19  ;;  %v858_v7 = vadd.f32 %v2472_v51, %v2701_v18 }
  0xe1   : > { %1607 = vmatpush1.bf16.msra.mxu0 %v1522_v61  ;;  %v1363_v20 = vmul.f32 0.00390625, %v1107_v62  ;;  %v1371_v21 = vmul.f32 0.00390625, %v1115_v63  ;;  %v1117_v24 = vmax.f32 %v861_v0, 0.0  ;;  %v852_v25 = vadd.f32 %v2478_v53, %v2703_v19 }
  0xe2   : > { %v1524_v26 = vpack.c.bf16 %v1356_v2, %v1348_v57  ;;  %v1365_v27 = vmul.f32 0.00390625, %v1109_v3  ;;  %v1106_v32 = vmax.f32 %v850_v4, 0.0  ;;  %v1114_v33 = vmax.f32 %v858_v7, 0.0 }
  0xe3   : > { %v1531_v34 = vpack.c.bf16 %v1371_v21, %v1363_v20  ;;  %v1373_v35 = vmul.f32 0.00390625, %v1117_v24  ;;  %v860_v36 = vadd.f32 %v2478_v53, %v2701_v18  ;;  %v1108_v37 = vmax.f32 %v852_v25, 0.0  ;;  %v2741_v20 = vpop.permute.xlu1 %610  ;;  %v2743_v21 = vpop.permute.xlu0 %605 }
  0xe4   : > { %1648 = vmatpush1.bf16.msra.mxu1 %v1524_v26  ;;  %v1362_v42 = vmul.f32 0.00390625, %v1106_v32  ;;  %v1370_v43 = vmul.f32 0.00390625, %v1114_v33  ;;  %v867_v44 = vadd.f32 %v2475_v52, %v2723_v8  ;;  %v875_v45 = vadd.f32 %v2475_v52, %v2721_v5 }
  0xe5   : > { %1608 = vmatprep.subr.bf16.mxu0 %v1531_v34  ;;  %v1533_v46 = vpack.c.bf16 %v1373_v35, %v1365_v27  ;;  %v1116_v47 = vmax.f32 %v860_v36, 0.0  ;;  %v1364_v57 = vmul.f32 0.00390625, %v1108_v37  ;;  %v869_v58 = vadd.f32 %v2481_v54, %v2723_v8 }
  0xe6   : > { %v1530_v61 = vpack.c.bf16 %v1370_v43, %v1362_v42  ;;  %v1123_v62 = vmax.f32 %v867_v44, 0.0  ;;  %v1131_v63 = vmax.f32 %v875_v45, 0.0  ;;  %v877_v0 = vadd.f32 %v2481_v54, %v2721_v5 }
  0xe7   : > { %1649 = vmatprep.subr.bf16.mxu1 %v1533_v46  ;;  %v1372_v2 = vmul.f32 0.00390625, %v1116_v47  ;;  %v1125_v3 = vmax.f32 %v869_v58, 0.0  ;;  %v866_v4 = vadd.f32 %v2472_v51, %v2723_v8  ;;  %v874_v7 = vadd.f32 %v2472_v51, %v2721_v5 }
  0xe8   : > { %1609 = vmatpush1.bf16.msra.mxu0 %v1530_v61  ;;  %v1379_v24 = vmul.f32 0.00390625, %v1123_v62  ;;  %v1387_v25 = vmul.f32 0.00390625, %v1131_v63  ;;  %v1133_v26 = vmax.f32 %v877_v0, 0.0  ;;  %v868_v27 = vadd.f32 %v2478_v53, %v2723_v8 }
  0xe9   : > { %v1532_v32 = vpack.c.bf16 %v1372_v2, %v1364_v57  ;;  %v1381_v33 = vmul.f32 0.00390625, %v1125_v3  ;;  %v1122_v34 = vmax.f32 %v866_v4, 0.0  ;;  %v1130_v35 = vmax.f32 %v874_v7, 0.0 }
  0xea   : > { %v1539_v36 = vpack.c.bf16 %v1387_v25, %v1379_v24  ;;  %v1389_v37 = vmul.f32 0.00390625, %v1133_v26  ;;  %v876_v42 = vadd.f32 %v2478_v53, %v2721_v5  ;;  %v1124_v43 = vmax.f32 %v868_v27, 0.0  ;;  %v2761_v26 = vpop.permute.xlu1 %620  ;;  %v2763_v27 = vpop.permute.xlu0 %615 }
  0xeb   : > { %1650 = vmatpush1.bf16.msra.mxu1 %v1532_v32  ;;  %v1378_v44 = vmul.f32 0.00390625, %v1122_v34  ;;  %v1386_v45 = vmul.f32 0.00390625, %v1130_v35  ;;  %v883_v46 = vadd.f32 %v2475_v52, %v2743_v21  ;;  %v891_v47 = vadd.f32 %v2475_v52, %v2741_v20 }
  0xec   : > { %1610 = vmatprep.subr.bf16.mxu0 %v1539_v36  ;;  %v1541_v57 = vpack.c.bf16 %v1389_v37, %v1381_v33  ;;  %v1132_v58 = vmax.f32 %v876_v42, 0.0  ;;  %v1380_v61 = vmul.f32 0.00390625, %v1124_v43  ;;  %v885_v62 = vadd.f32 %v2481_v54, %v2743_v21 }
  0xed   : > { %v1538_v63 = vpack.c.bf16 %v1386_v45, %v1378_v44  ;;  %v1139_v0 = vmax.f32 %v883_v46, 0.0  ;;  %v1147_v2 = vmax.f32 %v891_v47, 0.0  ;;  %v893_v3 = vadd.f32 %v2481_v54, %v2741_v20 }
  0xee   : > { %1651 = vmatprep.subr.bf16.mxu1 %v1541_v57  ;;  %v1388_v4 = vmul.f32 0.00390625, %v1132_v58  ;;  %v1141_v7 = vmax.f32 %v885_v62, 0.0  ;;  %v882_v24 = vadd.f32 %v2472_v51, %v2743_v21  ;;  %v890_v25 = vadd.f32 %v2472_v51, %v2741_v20 }
  0xef   : > { %1611 = vmatpush1.bf16.msra.mxu0 %v1538_v63  ;;  %v1395_v32 = vmul.f32 0.00390625, %v1139_v0  ;;  %v1403_v33 = vmul.f32 0.00390625, %v1147_v2  ;;  %v1149_v34 = vmax.f32 %v893_v3, 0.0  ;;  %v884_v35 = vadd.f32 %v2478_v53, %v2743_v21 }
  0xf0   : > { %v1540_v36 = vpack.c.bf16 %v1388_v4, %v1380_v61  ;;  %v1397_v37 = vmul.f32 0.00390625, %v1141_v7  ;;  %v1138_v42 = vmax.f32 %v882_v24, 0.0  ;;  %v1146_v43 = vmax.f32 %v890_v25, 0.0 }
  0xf1   : > { %v1547_v44 = vpack.c.bf16 %v1403_v33, %v1395_v32  ;;  %v1405_v45 = vmul.f32 0.00390625, %v1149_v34  ;;  %v892_v46 = vadd.f32 %v2478_v53, %v2741_v20  ;;  %v1140_v47 = vmax.f32 %v884_v35, 0.0 }
  0xf2   : > { %1652 = vmatpush1.bf16.msra.mxu1 %v1540_v36  ;;  %v1394_v57 = vmul.f32 0.00390625, %v1138_v42  ;;  %v1402_v58 = vmul.f32 0.00390625, %v1146_v43  ;;  %v899_v62 = vadd.f32 %v2475_v52, %v2763_v27  ;;  %v907_v63 = vadd.f32 %v2475_v52, %v2761_v26  ;;  %v2781_v36 = vpop.permute.xlu1 %630 }
  0xf3   : > { %1612 = vmatprep.subr.bf16.mxu0 %v1547_v44  ;;  %v1549_v61 = vpack.c.bf16 %v1405_v45, %v1397_v37  ;;  %v1148_v0 = vmax.f32 %v892_v46, 0.0  ;;  %v1396_v2 = vmul.f32 0.00390625, %v1140_v47  ;;  %v901_v3 = vadd.f32 %v2481_v54, %v2763_v27  ;;  %v2783_v37 = vpop.permute.xlu0 %625 }
  0xf4   : > { %v1546_v4 = vpack.c.bf16 %v1402_v58, %v1394_v57  ;;  %v1155_v7 = vmax.f32 %v899_v62, 0.0  ;;  %v1163_v24 = vmax.f32 %v907_v63, 0.0  ;;  %v909_v25 = vadd.f32 %v2481_v54, %v2761_v26 }
  0xf5   : > { %1653 = vmatprep.subr.bf16.mxu1 %v1549_v61  ;;  %v1404_v32 = vmul.f32 0.00390625, %v1148_v0  ;;  %v1157_v33 = vmax.f32 %v901_v3, 0.0  ;;  %v898_v34 = vadd.f32 %v2472_v51, %v2763_v27  ;;  %v906_v35 = vadd.f32 %v2472_v51, %v2761_v26 }
  0xf6   : > { %1613 = vmatpush1.bf16.msra.mxu0 %v1546_v4  ;;  %v1411_v42 = vmul.f32 0.00390625, %v1155_v7  ;;  %v1419_v43 = vmul.f32 0.00390625, %v1163_v24  ;;  %v1165_v44 = vmax.f32 %v909_v25, 0.0  ;;  %v900_v45 = vadd.f32 %v2478_v53, %v2763_v27 }
  0xf7   : > { %v1548_v46 = vpack.c.bf16 %v1404_v32, %v1396_v2  ;;  %v1413_v47 = vmul.f32 0.00390625, %v1157_v33  ;;  %v1154_v57 = vmax.f32 %v898_v34, 0.0  ;;  %v1162_v58 = vmax.f32 %v906_v35, 0.0 }
  0xf8   : > { %v1555_v62 = vpack.c.bf16 %v1419_v43, %v1411_v42  ;;  %v1421_v63 = vmul.f32 0.00390625, %v1165_v44  ;;  %v908_v61 = vadd.f32 %v2478_v53, %v2761_v26  ;;  %v1156_v0 = vmax.f32 %v900_v45, 0.0 }
  0xf9   : > { %1654 = vmatpush1.bf16.msra.mxu1 %v1548_v46  ;;  %v1410_v3 = vmul.f32 0.00390625, %v1154_v57  ;;  %v1418_v1 = vmul.f32 0.00390625, %v1162_v58  ;;  %v915_v4 = vadd.f32 %v2475_v52, %v2783_v37  ;;  %v923_v7 = vadd.f32 %v2475_v52, %v2781_v36 }
  0xfa   : > { %1614 = vmatprep.subr.bf16.mxu0 %v1555_v62  ;;  %v1557_v2 = vpack.c.bf16 %v1421_v63, %v1413_v47  ;;  %v1164_v24 = vmax.f32 %v908_v61, 0.0  ;;  %v1412_v25 = vmul.f32 0.00390625, %v1156_v0  ;;  %v917_v32 = vadd.f32 %v2481_v54, %v2783_v37 }
  0xfb   : > { %v1554_v33 = vpack.c.bf16 %v1418_v1, %v1410_v3  ;;  %v1171_v34 = vmax.f32 %v915_v4, 0.0  ;;  %v1179_v35 = vmax.f32 %v923_v7, 0.0  ;;  %v925_v42 = vadd.f32 %v2481_v54, %v2781_v36 }
  0xfc   : > { %1655 = vmatprep.subr.bf16.mxu1 %v1557_v2  ;;  %v1420_v43 = vmul.f32 0.00390625, %v1164_v24  ;;  %v1173_v44 = vmax.f32 %v917_v32, 0.0  ;;  %v914_v45 = vadd.f32 %v2472_v51, %v2783_v37  ;;  %v922_v52 = vadd.f32 %v2472_v51, %v2781_v36 }
  0xfd   : > { %1615 = vmatpush1.bf16.msra.mxu0 %v1554_v33  ;;  %v1427_v46 = vmul.f32 0.00390625, %v1171_v34  ;;  %v1435_v47 = vmul.f32 0.00390625, %v1179_v35  ;;  %v1181_v57 = vmax.f32 %v925_v42, 0.0  ;;  %v916_v1 = vadd.f32 %v2478_v53, %v2783_v37 }
  0xfe   : > { %v1556_v58 = vpack.c.bf16 %v1420_v43, %v1412_v25  ;;  %v1429_v62 = vmul.f32 0.00390625, %v1173_v44  ;;  %v1170_v63 = vmax.f32 %v914_v45, 0.0  ;;  %v1178_v54 = vmax.f32 %v922_v52, 0.0 }
  0xff   : > { %v1563_v61 = vpack.c.bf16 %v1435_v47, %v1427_v46  ;;  %v1437_v0 = vmul.f32 0.00390625, %v1181_v57  ;;  %v924_v3 = vadd.f32 %v2478_v53, %v2781_v36  ;;  %v1172_v4 = vmax.f32 %v916_v1, 0.0 }
 0x100   : > { %1656 = vmatpush1.bf16.msra.mxu1 %v1556_v58  ;;  %v1426_v7 = vmul.f32 0.00390625, %v1170_v63  ;;  %v1434_v51 = vmul.f32 0.00390625, %v1178_v54  ;;  %v679_v2 = vadd.f32 %v2417_v11, %v2487_v56  ;;  %v687_v24 = vadd.f32 %v2417_v11, %v2507_v15 }
 0x101   : > { %1616 = vmatprep.subr.bf16.mxu0 %v1563_v61  ;;  %v1565_v25 = vpack.c.bf16 %v1437_v0, %v1429_v62  ;;  %v1180_v32 = vmax.f32 %v924_v3, 0.0  ;;  %v1428_v33 = vmul.f32 0.00390625, %v1172_v4  ;;  %v681_v34 = vadd.f32 %v2423_v13, %v2487_v56 }
 0x102   : > { %v1562_v35 = vpack.c.bf16 %v1434_v51, %v1426_v7  ;;  %v935_v42 = vmax.f32 %v679_v2, 0.0  ;;  %v943_v53 = vmax.f32 %v687_v24, 0.0  ;;  %v689_v43 = vadd.f32 %v2423_v13, %v2507_v15  ;;  %v2822_v51 = vld.sshfl [vmem:[%s2466_s18] sm:$0x33 pattern:$0x76325410] }
 0x103   : > { %1657 = vmatprep.subr.bf16.mxu1 %v1565_v25  ;;  %v1436_v44 = vmul.f32 0.00390625, %v1180_v32  ;;  %v937_v45 = vmax.f32 %v681_v34, 0.0  ;;  %v678_v52 = vadd.f32 %v2414_v10, %v2487_v56  ;;  %v686_v46 = vadd.f32 %v2414_v10, %v2507_v15 }
 0x104   : > { %1617 = vmatpush1.bf16.msra.mxu0 %v1562_v35  ;;  %v1191_v47 = vmul.f32 0.00390625, %v935_v42  ;;  %v1199_v57 = vmul.f32 0.00390625, %v943_v53  ;;  %v945_v1 = vmax.f32 %v689_v43, 0.0  ;;  %v680_v58 = vadd.f32 %v2420_v12, %v2487_v56 }
 0x105   : > { %v1564_v62 = vpack.c.bf16 %v1436_v44, %v1428_v33  ;;  %v1193_v63 = vmul.f32 0.00390625, %v937_v45  ;;  %v934_v54 = vmax.f32 %v678_v52, 0.0  ;;  %v942_v61 = vmax.f32 %v686_v46, 0.0 }
 0x106   : > { %v1447_v0 = vpack.c.bf16 %v1199_v57, %v1191_v47  ;;  %v1201_v3 = vmul.f32 0.00390625, %v945_v1  ;;  %v688_v4 = vadd.f32 %v2420_v12, %v2507_v15  ;;  %v936_v7 = vmax.f32 %v680_v58, 0.0 }
 0x107   : > { %1658 = vmatpush1.bf16.msra.mxu1 %v1564_v62  ;;  %1619 = vmatmul.mubr.bf16.vlgmr.msra.gmra.mrb[0].mxu0 %v2822_v51  ;;  %v1190_v2 = vmul.f32 0.00390625, %v934_v54  ;;  %v1198_v24 = vmul.f32 0.00390625, %v942_v61  ;;  %v695_v56 = vadd.f32 %v2417_v11, %v2485_v55  ;;  %v703_v25 = vadd.f32 %v2417_v11, %v2505_v6 }
 0x108   : > { %1668 = vmatprep.subr.bf16.mxu0 %v1447_v0  ;;  %v1449_v32 = vpack.c.bf16 %v1201_v3, %v1193_v63  ;;  %v944_v33 = vmax.f32 %v688_v4, 0.0  ;;  %v1192_v34 = vmul.f32 0.00390625, %v936_v7  ;;  %v697_v15 = vadd.f32 %v2423_v13, %v2485_v55  ;;  %1700 = vmatprep.mubr.bf16.mxu0 %v2469_v50 }
 0x109   : > { %v1446_v35 = vpack.c.bf16 %v1198_v24, %v1190_v2  ;;  %v951_v42 = vmax.f32 %v695_v56, 0.0  ;;  %v959_v53 = vmax.f32 %v703_v25, 0.0  ;;  %v705_v43 = vadd.f32 %v2423_v13, %v2505_v6 }
 0x10a   : > { %1709 = vmatprep.subr.bf16.mxu1 %v1449_v32  ;;  %1660 = vmatmul.mubr.bf16.vlgmr.msra.gmra.mrb[0].mxu1 %v2822_v51  ;;  %v1200_v44 = vmul.f32 0.00390625, %v944_v33  ;;  %v953_v45 = vmax.f32 %v697_v15, 0.0  ;;  %v694_v52 = vadd.f32 %v2414_v10, %v2485_v55  ;;  %v702_v46 = vadd.f32 %v2414_v10, %v2505_v6 }
 0x10b   : > { %1669 = vmatpush1.bf16.msra.mxu0 %v1446_v35  ;;  %v1207_v47 = vmul.f32 0.00390625, %v951_v42  ;;  %v1215_v57 = vmul.f32 0.00390625, %v959_v53  ;;  %v961_v1 = vmax.f32 %v705_v43, 0.0  ;;  %v696_v58 = vadd.f32 %v2420_v12, %v2485_v55  ;;  %1741 = vmatprep.mubr.bf16.mxu1 %v2469_v50 }
 0x10c   : > { %v1448_v62 = vpack.c.bf16 %v1200_v44, %v1192_v34  ;;  %v1209_v63 = vmul.f32 0.00390625, %v953_v45  ;;  %v950_v54 = vmax.f32 %v694_v52, 0.0  ;;  %v958_v61 = vmax.f32 %v702_v46, 0.0 }
 0x10d   : > { %v1455_v0 = vpack.c.bf16 %v1215_v57, %v1207_v47  ;;  %v1217_v3 = vmul.f32 0.00390625, %v961_v1  ;;  %v704_v4 = vadd.f32 %v2420_v12, %v2505_v6  ;;  %v952_v7 = vmax.f32 %v696_v58, 0.0 }
 0x10e   : > { %1710 = vmatpush1.bf16.msra.mxu1 %v1448_v62  ;;  %v1206_v2 = vmul.f32 0.00390625, %v950_v54  ;;  %v1214_v24 = vmul.f32 0.00390625, %v958_v61  ;;  %v711_v56 = vadd.f32 %v2417_v11, %v2525_v41  ;;  %v719_v55 = vadd.f32 %v2417_v11, %v2523_v40 }
 0x10f   : > { %1670 = vmatprep.subr.bf16.mxu0 %v1455_v0  ;;  %v1457_v50 = vpack.c.bf16 %v1217_v3, %v1209_v63  ;;  %v960_v25 = vmax.f32 %v704_v4, 0.0  ;;  %v1208_v32 = vmul.f32 0.00390625, %v952_v7  ;;  %v713_v33 = vadd.f32 %v2423_v13, %v2525_v41 }
 0x110   : > { %v1454_v34 = vpack.c.bf16 %v1214_v24, %v1206_v2  ;;  %v967_v15 = vmax.f32 %v711_v56, 0.0  ;;  %v975_v6 = vmax.f32 %v719_v55, 0.0  ;;  %v721_v35 = vadd.f32 %v2423_v13, %v2523_v40 }
 0x111   : > { %1711 = vmatprep.subr.bf16.mxu1 %v1457_v50  ;;  %v1216_v42 = vmul.f32 0.00390625, %v960_v25  ;;  %v969_v53 = vmax.f32 %v713_v33, 0.0  ;;  %v710_v43 = vadd.f32 %v2414_v10, %v2525_v41  ;;  %v718_v44 = vadd.f32 %v2414_v10, %v2523_v40 }
 0x112   : > { %1671 = vmatpush1.bf16.msra.mxu0 %v1454_v34  ;;  %v1223_v45 = vmul.f32 0.00390625, %v967_v15  ;;  %v1231_v52 = vmul.f32 0.00390625, %v975_v6  ;;  %v977_v46 = vmax.f32 %v721_v35, 0.0  ;;  %v712_v47 = vadd.f32 %v2420_v12, %v2525_v41 }
 0x113   : > { %v1456_v57 = vpack.c.bf16 %v1216_v42, %v1208_v32  ;;  %v1225_v1 = vmul.f32 0.00390625, %v969_v53  ;;  %v966_v58 = vmax.f32 %v710_v43, 0.0  ;;  %v974_v62 = vmax.f32 %v718_v44, 0.0 }
 0x114   : > { %v1463_v63 = vpack.c.bf16 %v1231_v52, %v1223_v45  ;;  %v1233_v54 = vmul.f32 0.00390625, %v977_v46  ;;  %v720_v61 = vadd.f32 %v2420_v12, %v2523_v40  ;;  %v968_v0 = vmax.f32 %v712_v47, 0.0 }
 0x115   : > { %1712 = vmatpush1.bf16.msra.mxu1 %v1456_v57  ;;  %v1222_v3 = vmul.f32 0.00390625, %v966_v58  ;;  %v1230_v4 = vmul.f32 0.00390625, %v974_v62  ;;  %v727_v7 = vadd.f32 %v2417_v11, %v2543_v17  ;;  %v735_v2 = vadd.f32 %v2417_v11, %v2541_v16 }
 0x116   : > { %1672 = vmatprep.subr.bf16.mxu0 %v1463_v63  ;;  %v1465_v41 = vpack.c.bf16 %v1233_v54, %v1225_v1  ;;  %v976_v24 = vmax.f32 %v720_v61, 0.0  ;;  %v1224_v56 = vmul.f32 0.00390625, %v968_v0  ;;  %v729_v55 = vadd.f32 %v2423_v13, %v2543_v17 }
 0x117   : > { %v1462_v50 = vpack.c.bf16 %v1230_v4, %v1222_v3  ;;  %v983_v25 = vmax.f32 %v727_v7, 0.0  ;;  %v991_v40 = vmax.f32 %v735_v2, 0.0  ;;  %v737_v32 = vadd.f32 %v2423_v13, %v2541_v16 }
 0x118   : > { %1713 = vmatprep.subr.bf16.mxu1 %v1465_v41  ;;  %v1232_v33 = vmul.f32 0.00390625, %v976_v24  ;;  %v985_v34 = vmax.f32 %v729_v55, 0.0  ;;  %v726_v15 = vadd.f32 %v2414_v10, %v2543_v17  ;;  %v734_v6 = vadd.f32 %v2414_v10, %v2541_v16 }
 0x119   : > { %1673 = vmatpush1.bf16.msra.mxu0 %v1462_v50  ;;  %v1239_v35 = vmul.f32 0.00390625, %v983_v25  ;;  %v1247_v42 = vmul.f32 0.00390625, %v991_v40  ;;  %v993_v53 = vmax.f32 %v737_v32, 0.0  ;;  %v728_v43 = vadd.f32 %v2420_v12, %v2543_v17 }
 0x11a   : > { %v1464_v44 = vpack.c.bf16 %v1232_v33, %v1224_v56  ;;  %v1241_v45 = vmul.f32 0.00390625, %v985_v34  ;;  %v982_v52 = vmax.f32 %v726_v15, 0.0  ;;  %v990_v46 = vmax.f32 %v734_v6, 0.0 }
 0x11b   : > { %v1471_v47 = vpack.c.bf16 %v1247_v42, %v1239_v35  ;;  %v1249_v57 = vmul.f32 0.00390625, %v993_v53  ;;  %v736_v1 = vadd.f32 %v2420_v12, %v2541_v16  ;;  %v984_v58 = vmax.f32 %v728_v43, 0.0 }
 0x11c   : > { %1714 = vmatpush1.bf16.msra.mxu1 %v1464_v44  ;;  %v1238_v62 = vmul.f32 0.00390625, %v982_v52  ;;  %v1246_v63 = vmul.f32 0.00390625, %v990_v46  ;;  %v743_v54 = vadd.f32 %v2417_v11, %v2563_v49  ;;  %v751_v61 = vadd.f32 %v2417_v11, %v2561_v48 }
 0x11d   : > { %1674 = vmatprep.subr.bf16.mxu0 %v1471_v47  ;;  %v1473_v17 = vpack.c.bf16 %v1249_v57, %v1241_v45  ;;  %v992_v0 = vmax.f32 %v736_v1, 0.0  ;;  %v1240_v3 = vmul.f32 0.00390625, %v984_v58  ;;  %v745_v4 = vadd.f32 %v2423_v13, %v2563_v49 }
 0x11e   : > { %v1470_v7 = vpack.c.bf16 %v1246_v63, %v1238_v62  ;;  %v999_v2 = vmax.f32 %v743_v54, 0.0  ;;  %v1007_v16 = vmax.f32 %v751_v61, 0.0  ;;  %v753_v41 = vadd.f32 %v2423_v13, %v2561_v48 }
 0x11f   : > { %1715 = vmatprep.subr.bf16.mxu1 %v1473_v17  ;;  %v1248_v24 = vmul.f32 0.00390625, %v992_v0  ;;  %v1001_v56 = vmax.f32 %v745_v4, 0.0  ;;  %v742_v55 = vadd.f32 %v2414_v10, %v2563_v49  ;;  %v750_v50 = vadd.f32 %v2414_v10, %v2561_v48 }
 0x120   : > { %1675 = vmatpush1.bf16.msra.mxu0 %v1470_v7  ;;  %v1255_v25 = vmul.f32 0.00390625, %v999_v2  ;;  %v1263_v40 = vmul.f32 0.00390625, %v1007_v16  ;;  %v1009_v32 = vmax.f32 %v753_v41, 0.0  ;;  %v744_v33 = vadd.f32 %v2420_v12, %v2563_v49 }
 0x121   : > { %v1472_v34 = vpack.c.bf16 %v1248_v24, %v1240_v3  ;;  %v1257_v15 = vmul.f32 0.00390625, %v1001_v56  ;;  %v998_v6 = vmax.f32 %v742_v55, 0.0  ;;  %v1006_v35 = vmax.f32 %v750_v50, 0.0 }
 0x122   : > { %v1479_v42 = vpack.c.bf16 %v1263_v40, %v1255_v25  ;;  %v1265_v53 = vmul.f32 0.00390625, %v1009_v32  ;;  %v752_v43 = vadd.f32 %v2420_v12, %v2561_v48  ;;  %v1000_v44 = vmax.f32 %v744_v33, 0.0 }
 0x123   : > { %1716 = vmatpush1.bf16.msra.mxu1 %v1472_v34  ;;  %v1254_v45 = vmul.f32 0.00390625, %v998_v6  ;;  %v1262_v52 = vmul.f32 0.00390625, %v1006_v35  ;;  %v759_v46 = vadd.f32 %v2417_v11, %v2583_v31  ;;  %v767_v47 = vadd.f32 %v2417_v11, %v2581_v30 }
 0x124   : > { %1676 = vmatprep.subr.bf16.mxu0 %v1479_v42  ;;  %v1481_v49 = vpack.c.bf16 %v1265_v53, %v1257_v15  ;;  %v1008_v57 = vmax.f32 %v752_v43, 0.0  ;;  %v1256_v1 = vmul.f32 0.00390625, %v1000_v44  ;;  %v761_v58 = vadd.f32 %v2423_v13, %v2583_v31 }
 0x125   : > { %v1478_v62 = vpack.c.bf16 %v1262_v52, %v1254_v45  ;;  %v1015_v63 = vmax.f32 %v759_v46, 0.0  ;;  %v1023_v48 = vmax.f32 %v767_v47, 0.0  ;;  %v769_v54 = vadd.f32 %v2423_v13, %v2581_v30 }
 0x126   : > { %1717 = vmatprep.subr.bf16.mxu1 %v1481_v49  ;;  %v1264_v61 = vmul.f32 0.00390625, %v1008_v57  ;;  %v1017_v17 = vmax.f32 %v761_v58, 0.0  ;;  %v758_v0 = vadd.f32 %v2414_v10, %v2583_v31  ;;  %v766_v3 = vadd.f32 %v2414_v10, %v2581_v30 }
 0x127   : > { %1677 = vmatpush1.bf16.msra.mxu0 %v1478_v62  ;;  %v1271_v4 = vmul.f32 0.00390625, %v1015_v63  ;;  %v1279_v7 = vmul.f32 0.00390625, %v1023_v48  ;;  %v1025_v2 = vmax.f32 %v769_v54, 0.0  ;;  %v760_v16 = vadd.f32 %v2420_v12, %v2583_v31 }
 0x128   : > { %v1480_v41 = vpack.c.bf16 %v1264_v61, %v1256_v1  ;;  %v1273_v24 = vmul.f32 0.00390625, %v1017_v17  ;;  %v1014_v56 = vmax.f32 %v758_v0, 0.0  ;;  %v1022_v55 = vmax.f32 %v766_v3, 0.0 }
 0x129   : > { %v1487_v50 = vpack.c.bf16 %v1279_v7, %v1271_v4  ;;  %v1281_v25 = vmul.f32 0.00390625, %v1025_v2  ;;  %v768_v40 = vadd.f32 %v2420_v12, %v2581_v30  ;;  %v1016_v32 = vmax.f32 %v760_v16, 0.0 }
 0x12a   : > { %1718 = vmatpush1.bf16.msra.mxu1 %v1480_v41  ;;  %v1270_v33 = vmul.f32 0.00390625, %v1014_v56  ;;  %v1278_v34 = vmul.f32 0.00390625, %v1022_v55  ;;  %v775_v15 = vadd.f32 %v2417_v11, %v2603_v14  ;;  %v783_v6 = vadd.f32 %v2417_v11, %v2601_v9 }
 0x12b   : > { %1678 = vmatprep.subr.bf16.mxu0 %v1487_v50  ;;  %v1489_v31 = vpack.c.bf16 %v1281_v25, %v1273_v24  ;;  %v1024_v35 = vmax.f32 %v768_v40, 0.0  ;;  %v1272_v42 = vmul.f32 0.00390625, %v1016_v32  ;;  %v777_v53 = vadd.f32 %v2423_v13, %v2603_v14 }
 0x12c   : > { %v1486_v43 = vpack.c.bf16 %v1278_v34, %v1270_v33  ;;  %v1031_v44 = vmax.f32 %v775_v15, 0.0  ;;  %v1039_v30 = vmax.f32 %v783_v6, 0.0  ;;  %v785_v45 = vadd.f32 %v2423_v13, %v2601_v9 }
 0x12d   : > { %1719 = vmatprep.subr.bf16.mxu1 %v1489_v31  ;;  %v1280_v52 = vmul.f32 0.00390625, %v1024_v35  ;;  %v1033_v46 = vmax.f32 %v777_v53, 0.0  ;;  %v774_v47 = vadd.f32 %v2414_v10, %v2603_v14  ;;  %v782_v49 = vadd.f32 %v2414_v10, %v2601_v9 }
 0x12e   : > { %1679 = vmatpush1.bf16.msra.mxu0 %v1486_v43  ;;  %v1287_v57 = vmul.f32 0.00390625, %v1031_v44  ;;  %v1295_v1 = vmul.f32 0.00390625, %v1039_v30  ;;  %v1041_v58 = vmax.f32 %v785_v45, 0.0  ;;  %v776_v62 = vadd.f32 %v2420_v12, %v2603_v14 }
 0x12f   : > { %v1488_v63 = vpack.c.bf16 %v1280_v52, %v1272_v42  ;;  %v1289_v48 = vmul.f32 0.00390625, %v1033_v46  ;;  %v1030_v54 = vmax.f32 %v774_v47, 0.0  ;;  %v1038_v61 = vmax.f32 %v782_v49, 0.0 }
 0x130   : > { %v1495_v17 = vpack.c.bf16 %v1295_v1, %v1287_v57  ;;  %v1297_v0 = vmul.f32 0.00390625, %v1041_v58  ;;  %v784_v3 = vadd.f32 %v2420_v12, %v2601_v9  ;;  %v1032_v4 = vmax.f32 %v776_v62, 0.0 }
 0x131   : > { %1720 = vmatpush1.bf16.msra.mxu1 %v1488_v63  ;;  %v1286_v7 = vmul.f32 0.00390625, %v1030_v54  ;;  %v1294_v2 = vmul.f32 0.00390625, %v1038_v61  ;;  %v791_v16 = vadd.f32 %v2417_v11, %v2623_v60  ;;  %v799_v41 = vadd.f32 %v2417_v11, %v2621_v59 }
 0x132   : > { %1680 = vmatprep.subr.bf16.mxu0 %v1495_v17  ;;  %v1497_v14 = vpack.c.bf16 %v1297_v0, %v1289_v48  ;;  %v1040_v24 = vmax.f32 %v784_v3, 0.0  ;;  %v1288_v56 = vmul.f32 0.00390625, %v1032_v4  ;;  %v793_v55 = vadd.f32 %v2423_v13, %v2623_v60 }
 0x133   : > { %v1494_v50 = vpack.c.bf16 %v1294_v2, %v1286_v7  ;;  %v1047_v25 = vmax.f32 %v791_v16, 0.0  ;;  %v1055_v9 = vmax.f32 %v799_v41, 0.0  ;;  %v801_v40 = vadd.f32 %v2423_v13, %v2621_v59 }
 0x134   : > { %1721 = vmatprep.subr.bf16.mxu1 %v1497_v14  ;;  %v1296_v32 = vmul.f32 0.00390625, %v1040_v24  ;;  %v1049_v33 = vmax.f32 %v793_v55, 0.0  ;;  %v790_v34 = vadd.f32 %v2414_v10, %v2623_v60  ;;  %v798_v15 = vadd.f32 %v2414_v10, %v2621_v59 }
 0x135   : > { %1681 = vmatpush1.bf16.msra.mxu0 %v1494_v50  ;;  %v1303_v6 = vmul.f32 0.00390625, %v1047_v25  ;;  %v1311_v31 = vmul.f32 0.00390625, %v1055_v9  ;;  %v1057_v35 = vmax.f32 %v801_v40, 0.0  ;;  %v792_v42 = vadd.f32 %v2420_v12, %v2623_v60 }
 0x136   : > { %v1496_v53 = vpack.c.bf16 %v1296_v32, %v1288_v56  ;;  %v1305_v43 = vmul.f32 0.00390625, %v1049_v33  ;;  %v1046_v44 = vmax.f32 %v790_v34, 0.0  ;;  %v1054_v30 = vmax.f32 %v798_v15, 0.0 }
 0x137   : > { %v1503_v45 = vpack.c.bf16 %v1311_v31, %v1303_v6  ;;  %v1313_v52 = vmul.f32 0.00390625, %v1057_v35  ;;  %v800_v46 = vadd.f32 %v2420_v12, %v2621_v59  ;;  %v1048_v47 = vmax.f32 %v792_v42, 0.0 }
 0x138   : > { %1722 = vmatpush1.bf16.msra.mxu1 %v1496_v53  ;;  %v1302_v49 = vmul.f32 0.00390625, %v1046_v44  ;;  %v1310_v57 = vmul.f32 0.00390625, %v1054_v30  ;;  %v807_v1 = vadd.f32 %v2417_v11, %v2643_v39  ;;  %v815_v58 = vadd.f32 %v2417_v11, %v2641_v38 }
 0x139   : > { %1682 = vmatprep.subr.bf16.mxu0 %v1503_v45  ;;  %v1505_v60 = vpack.c.bf16 %v1313_v52, %v1305_v43  ;;  %v1056_v62 = vmax.f32 %v800_v46, 0.0  ;;  %v1304_v63 = vmul.f32 0.00390625, %v1048_v47  ;;  %v809_v48 = vadd.f32 %v2423_v13, %v2643_v39 }
 0x13a   : > { %v1502_v54 = vpack.c.bf16 %v1310_v57, %v1302_v49  ;;  %v1063_v61 = vmax.f32 %v807_v1, 0.0  ;;  %v1071_v59 = vmax.f32 %v815_v58, 0.0  ;;  %v817_v17 = vadd.f32 %v2423_v13, %v2641_v38 }
 0x13b   : > { %1723 = vmatprep.subr.bf16.mxu1 %v1505_v60  ;;  %v1312_v0 = vmul.f32 0.00390625, %v1056_v62  ;;  %v1065_v3 = vmax.f32 %v809_v48, 0.0  ;;  %v806_v4 = vadd.f32 %v2414_v10, %v2643_v39  ;;  %v814_v7 = vadd.f32 %v2414_v10, %v2641_v38 }
 0x13c   : > { %1683 = vmatpush1.bf16.msra.mxu0 %v1502_v54  ;;  %v1319_v2 = vmul.f32 0.00390625, %v1063_v61  ;;  %v1327_v16 = vmul.f32 0.00390625, %v1071_v59  ;;  %v1073_v41 = vmax.f32 %v817_v17, 0.0  ;;  %v808_v14 = vadd.f32 %v2420_v12, %v2643_v39 }
 0x13d   : > { %v1504_v24 = vpack.c.bf16 %v1312_v0, %v1304_v63  ;;  %v1321_v56 = vmul.f32 0.00390625, %v1065_v3  ;;  %v1062_v55 = vmax.f32 %v806_v4, 0.0  ;;  %v1070_v50 = vmax.f32 %v814_v7, 0.0 }
 0x13e   : > { %v1511_v25 = vpack.c.bf16 %v1327_v16, %v1319_v2  ;;  %v1329_v9 = vmul.f32 0.00390625, %v1073_v41  ;;  %v816_v40 = vadd.f32 %v2420_v12, %v2641_v38  ;;  %v1064_v32 = vmax.f32 %v808_v14, 0.0 }
 0x13f   : > { %1724 = vmatpush1.bf16.msra.mxu1 %v1504_v24  ;;  %v1318_v33 = vmul.f32 0.00390625, %v1062_v55  ;;  %v1326_v34 = vmul.f32 0.00390625, %v1070_v50  ;;  %v823_v15 = vadd.f32 %v2417_v11, %v2663_v29  ;;  %v831_v6 = vadd.f32 %v2417_v11, %v2661_v28 }
 0x140   : > { %1684 = vmatprep.subr.bf16.mxu0 %v1511_v25  ;;  %v1513_v39 = vpack.c.bf16 %v1329_v9, %v1321_v56  ;;  %v1072_v31 = vmax.f32 %v816_v40, 0.0  ;;  %v1320_v35 = vmul.f32 0.00390625, %v1064_v32  ;;  %v825_v42 = vadd.f32 %v2423_v13, %v2663_v29 }
 0x141   : > { %v1510_v53 = vpack.c.bf16 %v1326_v34, %v1318_v33  ;;  %v1079_v43 = vmax.f32 %v823_v15, 0.0  ;;  %v1087_v38 = vmax.f32 %v831_v6, 0.0  ;;  %v833_v44 = vadd.f32 %v2423_v13, %v2661_v28 }
 0x142   : > { %1725 = vmatprep.subr.bf16.mxu1 %v1513_v39  ;;  %v1328_v30 = vmul.f32 0.00390625, %v1072_v31  ;;  %v1081_v45 = vmax.f32 %v825_v42, 0.0  ;;  %v822_v52 = vadd.f32 %v2414_v10, %v2663_v29  ;;  %v830_v46 = vadd.f32 %v2414_v10, %v2661_v28 }
 0x143   : > { %1685 = vmatpush1.bf16.msra.mxu0 %v1510_v53  ;;  %v1335_v47 = vmul.f32 0.00390625, %v1079_v43  ;;  %v1343_v49 = vmul.f32 0.00390625, %v1087_v38  ;;  %v1089_v57 = vmax.f32 %v833_v44, 0.0  ;;  %v824_v1 = vadd.f32 %v2420_v12, %v2663_v29 }
 0x144   : > { %v1512_v58 = vpack.c.bf16 %v1328_v30, %v1320_v35  ;;  %v1337_v60 = vmul.f32 0.00390625, %v1081_v45  ;;  %v1078_v62 = vmax.f32 %v822_v52, 0.0  ;;  %v1086_v63 = vmax.f32 %v830_v46, 0.0 }
 0x145   : > { %v1519_v48 = vpack.c.bf16 %v1343_v49, %v1335_v47  ;;  %v1345_v54 = vmul.f32 0.00390625, %v1089_v57  ;;  %v832_v61 = vadd.f32 %v2420_v12, %v2661_v28  ;;  %v1080_v59 = vmax.f32 %v824_v1, 0.0 }
 0x146   : > { %1726 = vmatpush1.bf16.msra.mxu1 %v1512_v58  ;;  %v1334_v17 = vmul.f32 0.00390625, %v1078_v62  ;;  %v1342_v0 = vmul.f32 0.00390625, %v1086_v63  ;;  %v839_v3 = vadd.f32 %v2417_v11, %v2683_v23  ;;  %v847_v4 = vadd.f32 %v2417_v11, %v2681_v22 }
 0x147   : > { %1686 = vmatprep.subr.bf16.mxu0 %v1519_v48  ;;  %v1521_v29 = vpack.c.bf16 %v1345_v54, %v1337_v60  ;;  %v1088_v7 = vmax.f32 %v832_v61, 0.0  ;;  %v1336_v2 = vmul.f32 0.00390625, %v1080_v59  ;;  %v841_v16 = vadd.f32 %v2423_v13, %v2683_v23 }
 0x148   : > { %v1518_v41 = vpack.c.bf16 %v1342_v0, %v1334_v17  ;;  %v1095_v14 = vmax.f32 %v839_v3, 0.0  ;;  %v1103_v28 = vmax.f32 %v847_v4, 0.0  ;;  %v849_v24 = vadd.f32 %v2423_v13, %v2681_v22 }
 0x149   : > { %1727 = vmatprep.subr.bf16.mxu1 %v1521_v29  ;;  %v1344_v56 = vmul.f32 0.00390625, %v1088_v7  ;;  %v1097_v55 = vmax.f32 %v841_v16, 0.0  ;;  %v838_v50 = vadd.f32 %v2414_v10, %v2683_v23  ;;  %v846_v25 = vadd.f32 %v2414_v10, %v2681_v22 }
 0x14a   : > { %1687 = vmatpush1.bf16.msra.mxu0 %v1518_v41  ;;  %v1351_v9 = vmul.f32 0.00390625, %v1095_v14  ;;  %v1359_v40 = vmul.f32 0.00390625, %v1103_v28  ;;  %v1105_v32 = vmax.f32 %v849_v24, 0.0  ;;  %v840_v33 = vadd.f32 %v2420_v12, %v2683_v23 }
 0x14b   : > { %v1520_v34 = vpack.c.bf16 %v1344_v56, %v1336_v2  ;;  %v1353_v15 = vmul.f32 0.00390625, %v1097_v55  ;;  %v1094_v6 = vmax.f32 %v838_v50, 0.0  ;;  %v1102_v39 = vmax.f32 %v846_v25, 0.0 }
 0x14c   : > { %v1527_v31 = vpack.c.bf16 %v1359_v40, %v1351_v9  ;;  %v1361_v35 = vmul.f32 0.00390625, %v1105_v32  ;;  %v848_v42 = vadd.f32 %v2420_v12, %v2681_v22  ;;  %v1096_v53 = vmax.f32 %v840_v33, 0.0 }
 0x14d   : > { %1728 = vmatpush1.bf16.msra.mxu1 %v1520_v34  ;;  %v1350_v43 = vmul.f32 0.00390625, %v1094_v6  ;;  %v1358_v38 = vmul.f32 0.00390625, %v1102_v39  ;;  %v855_v44 = vadd.f32 %v2417_v11, %v2703_v19  ;;  %v863_v30 = vadd.f32 %v2417_v11, %v2701_v18 }
 0x14e   : > { %1688 = vmatprep.subr.bf16.mxu0 %v1527_v31  ;;  %v1529_v23 = vpack.c.bf16 %v1361_v35, %v1353_v15  ;;  %v1104_v45 = vmax.f32 %v848_v42, 0.0  ;;  %v1352_v52 = vmul.f32 0.00390625, %v1096_v53  ;;  %v857_v46 = vadd.f32 %v2423_v13, %v2703_v19 }
 0x14f   : > { %v1526_v47 = vpack.c.bf16 %v1358_v38, %v1350_v43  ;;  %v1111_v49 = vmax.f32 %v855_v44, 0.0  ;;  %v1119_v22 = vmax.f32 %v863_v30, 0.0  ;;  %v865_v57 = vadd.f32 %v2423_v13, %v2701_v18 }
 0x150   : > { %1729 = vmatprep.subr.bf16.mxu1 %v1529_v23  ;;  %v1360_v1 = vmul.f32 0.00390625, %v1104_v45  ;;  %v1113_v58 = vmax.f32 %v857_v46, 0.0  ;;  %v854_v60 = vadd.f32 %v2414_v10, %v2703_v19  ;;  %v862_v62 = vadd.f32 %v2414_v10, %v2701_v18 }
 0x151   : > { %1689 = vmatpush1.bf16.msra.mxu0 %v1526_v47  ;;  %v1367_v63 = vmul.f32 0.00390625, %v1111_v49  ;;  %v1375_v48 = vmul.f32 0.00390625, %v1119_v22  ;;  %v1121_v54 = vmax.f32 %v865_v57, 0.0  ;;  %v856_v61 = vadd.f32 %v2420_v12, %v2703_v19 }
 0x152   : > { %v1528_v59 = vpack.c.bf16 %v1360_v1, %v1352_v52  ;;  %v1369_v17 = vmul.f32 0.00390625, %v1113_v58  ;;  %v1110_v0 = vmax.f32 %v854_v60, 0.0  ;;  %v1118_v3 = vmax.f32 %v862_v62, 0.0 }
 0x153   : > { %v1535_v4 = vpack.c.bf16 %v1375_v48, %v1367_v63  ;;  %v1377_v29 = vmul.f32 0.00390625, %v1121_v54  ;;  %v864_v7 = vadd.f32 %v2420_v12, %v2701_v18  ;;  %v1112_v2 = vmax.f32 %v856_v61, 0.0 }
 0x154   : > { %1730 = vmatpush1.bf16.msra.mxu1 %v1528_v59  ;;  %v1366_v16 = vmul.f32 0.00390625, %v1110_v0  ;;  %v1374_v41 = vmul.f32 0.00390625, %v1118_v3  ;;  %v871_v14 = vadd.f32 %v2417_v11, %v2723_v8  ;;  %v879_v28 = vadd.f32 %v2417_v11, %v2721_v5 }
 0x155   : > { %1690 = vmatprep.subr.bf16.mxu0 %v1535_v4  ;;  %v1537_v19 = vpack.c.bf16 %v1377_v29, %v1369_v17  ;;  %v1120_v24 = vmax.f32 %v864_v7, 0.0  ;;  %v1368_v56 = vmul.f32 0.00390625, %v1112_v2  ;;  %v873_v55 = vadd.f32 %v2423_v13, %v2723_v8 }
 0x156   : > { %v1534_v50 = vpack.c.bf16 %v1374_v41, %v1366_v16  ;;  %v1127_v25 = vmax.f32 %v871_v14, 0.0  ;;  %v1135_v18 = vmax.f32 %v879_v28, 0.0  ;;  %v881_v9 = vadd.f32 %v2423_v13, %v2721_v5 }
 0x157   : > { %1731 = vmatprep.subr.bf16.mxu1 %v1537_v19  ;;  %v1376_v40 = vmul.f32 0.00390625, %v1120_v24  ;;  %v1129_v32 = vmax.f32 %v873_v55, 0.0  ;;  %v870_v33 = vadd.f32 %v2414_v10, %v2723_v8  ;;  %v878_v34 = vadd.f32 %v2414_v10, %v2721_v5 }
 0x158   : > { %1691 = vmatpush1.bf16.msra.mxu0 %v1534_v50  ;;  %v1383_v15 = vmul.f32 0.00390625, %v1127_v25  ;;  %v1391_v6 = vmul.f32 0.00390625, %v1135_v18  ;;  %v1137_v39 = vmax.f32 %v881_v9, 0.0  ;;  %v872_v31 = vadd.f32 %v2420_v12, %v2723_v8 }
 0x159   : > { %v1536_v35 = vpack.c.bf16 %v1376_v40, %v1368_v56  ;;  %v1385_v42 = vmul.f32 0.00390625, %v1129_v32  ;;  %v1126_v53 = vmax.f32 %v870_v33, 0.0  ;;  %v1134_v43 = vmax.f32 %v878_v34, 0.0 }
 0x15a   : > { %v1543_v38 = vpack.c.bf16 %v1391_v6, %v1383_v15  ;;  %v1393_v44 = vmul.f32 0.00390625, %v1137_v39  ;;  %v880_v30 = vadd.f32 %v2420_v12, %v2721_v5  ;;  %v1128_v23 = vmax.f32 %v872_v31, 0.0 }
 0x15b   : > { %1732 = vmatpush1.bf16.msra.mxu1 %v1536_v35  ;;  %v1382_v45 = vmul.f32 0.00390625, %v1126_v53  ;;  %v1390_v52 = vmul.f32 0.00390625, %v1134_v43  ;;  %v887_v46 = vadd.f32 %v2417_v11, %v2743_v21  ;;  %v895_v47 = vadd.f32 %v2417_v11, %v2741_v20 }
 0x15c   : > { %1692 = vmatprep.subr.bf16.mxu0 %v1543_v38  ;;  %v1545_v8 = vpack.c.bf16 %v1393_v44, %v1385_v42  ;;  %v1136_v49 = vmax.f32 %v880_v30, 0.0  ;;  %v1384_v22 = vmul.f32 0.00390625, %v1128_v23  ;;  %v889_v57 = vadd.f32 %v2423_v13, %v2743_v21 }
 0x15d   : > { %v1542_v1 = vpack.c.bf16 %v1390_v52, %v1382_v45  ;;  %v1143_v58 = vmax.f32 %v887_v46, 0.0  ;;  %v1151_v5 = vmax.f32 %v895_v47, 0.0  ;;  %v897_v60 = vadd.f32 %v2423_v13, %v2741_v20 }
 0x15e   : > { %1733 = vmatprep.subr.bf16.mxu1 %v1545_v8  ;;  %v1392_v62 = vmul.f32 0.00390625, %v1136_v49  ;;  %v1145_v63 = vmax.f32 %v889_v57, 0.0  ;;  %v886_v48 = vadd.f32 %v2414_v10, %v2743_v21  ;;  %v894_v54 = vadd.f32 %v2414_v10, %v2741_v20 }
 0x15f   : > { %1693 = vmatpush1.bf16.msra.mxu0 %v1542_v1  ;;  %v1399_v61 = vmul.f32 0.00390625, %v1143_v58  ;;  %v1407_v59 = vmul.f32 0.00390625, %v1151_v5  ;;  %v1153_v17 = vmax.f32 %v897_v60, 0.0  ;;  %v888_v0 = vadd.f32 %v2420_v12, %v2743_v21 }
 0x160   : > { %v1544_v3 = vpack.c.bf16 %v1392_v62, %v1384_v22  ;;  %v1401_v4 = vmul.f32 0.00390625, %v1145_v63  ;;  %v1142_v29 = vmax.f32 %v886_v48, 0.0  ;;  %v1150_v7 = vmax.f32 %v894_v54, 0.0 }
 0x161   : > { %v1551_v2 = vpack.c.bf16 %v1407_v59, %v1399_v61  ;;  %v1409_v16 = vmul.f32 0.00390625, %v1153_v17  ;;  %v896_v41 = vadd.f32 %v2420_v12, %v2741_v20  ;;  %v1144_v14 = vmax.f32 %v888_v0, 0.0 }
 0x162   : > { %1734 = vmatpush1.bf16.msra.mxu1 %v1544_v3  ;;  %v1398_v28 = vmul.f32 0.00390625, %v1142_v29  ;;  %v1406_v19 = vmul.f32 0.00390625, %v1150_v7  ;;  %v903_v24 = vadd.f32 %v2417_v11, %v2763_v27  ;;  %v911_v56 = vadd.f32 %v2417_v11, %v2761_v26 }
 0x163   : > { %1694 = vmatprep.subr.bf16.mxu0 %v1551_v2  ;;  %v1553_v21 = vpack.c.bf16 %v1409_v16, %v1401_v4  ;;  %v1152_v55 = vmax.f32 %v896_v41, 0.0  ;;  %v1400_v50 = vmul.f32 0.00390625, %v1144_v14  ;;  %v905_v25 = vadd.f32 %v2423_v13, %v2763_v27 }
 0x164   : > { %v1550_v18 = vpack.c.bf16 %v1406_v19, %v1398_v28  ;;  %v1159_v9 = vmax.f32 %v903_v24, 0.0  ;;  %v1167_v20 = vmax.f32 %v911_v56, 0.0  ;;  %v913_v40 = vadd.f32 %v2423_v13, %v2761_v26 }
 0x165   : > { %1735 = vmatprep.subr.bf16.mxu1 %v1553_v21  ;;  %v1408_v32 = vmul.f32 0.00390625, %v1152_v55  ;;  %v1161_v33 = vmax.f32 %v905_v25, 0.0  ;;  %v902_v34 = vadd.f32 %v2414_v10, %v2763_v27  ;;  %v910_v15 = vadd.f32 %v2414_v10, %v2761_v26 }
 0x166   : > { %1695 = vmatpush1.bf16.msra.mxu0 %v1550_v18  ;;  %v1415_v6 = vmul.f32 0.00390625, %v1159_v9  ;;  %v1423_v39 = vmul.f32 0.00390625, %v1167_v20  ;;  %v1169_v31 = vmax.f32 %v913_v40, 0.0  ;;  %v904_v35 = vadd.f32 %v2420_v12, %v2763_v27 }
 0x167   : > { %v1552_v42 = vpack.c.bf16 %v1408_v32, %v1400_v50  ;;  %v1417_v53 = vmul.f32 0.00390625, %v1161_v33  ;;  %v1158_v43 = vmax.f32 %v902_v34, 0.0  ;;  %v1166_v38 = vmax.f32 %v910_v15, 0.0 }
 0x168   : > { %v1559_v44 = vpack.c.bf16 %v1423_v39, %v1415_v6  ;;  %v1425_v30 = vmul.f32 0.00390625, %v1169_v31  ;;  %v912_v23 = vadd.f32 %v2420_v12, %v2761_v26  ;;  %v1160_v45 = vmax.f32 %v904_v35, 0.0  ;;  %v1777_v31 = vld [vmem:[%s3123_s3] sm:$0xf] }
 0x169   : > { %1736 = vmatpush1.bf16.msra.mxu1 %v1552_v42  ;;  %v1414_v52 = vmul.f32 0.00390625, %v1158_v43  ;;  %v1422_v46 = vmul.f32 0.00390625, %v1166_v38  ;;  %v919_v47 = vadd.f32 %v2417_v11, %v2783_v37  ;;  %v927_v8 = vadd.f32 %v2417_v11, %v2781_v36 }
 0x16a   : > { %1696 = vmatprep.subr.bf16.mxu0 %v1559_v44  ;;  %v1561_v27 = vpack.c.bf16 %v1425_v30, %v1417_v53  ;;  %v1168_v49 = vmax.f32 %v912_v23, 0.0  ;;  %v1416_v22 = vmul.f32 0.00390625, %v1160_v45  ;;  %v921_v57 = vadd.f32 %v2423_v13, %v2783_v37 }
 0x16b   : > { %v1558_v1 = vpack.c.bf16 %v1422_v46, %v1414_v52  ;;  %v1175_v58 = vmax.f32 %v919_v47, 0.0  ;;  %v1183_v26 = vmax.f32 %v927_v8, 0.0  ;;  %v929_v5 = vadd.f32 %v2423_v13, %v2781_v36 }
 0x16c   : > { %1737 = vmatprep.subr.bf16.mxu1 %v1561_v27  ;;  %v1424_v60 = vmul.f32 0.00390625, %v1168_v49  ;;  %v1177_v62 = vmax.f32 %v921_v57, 0.0  ;;  %v918_v63 = vadd.f32 %v2414_v10, %v2783_v37  ;;  %v926_v11 = vadd.f32 %v2414_v10, %v2781_v36 }
 0x16d   : > { %1697 = vmatpush1.bf16.msra.mxu0 %v1558_v1  ;;  %v1431_v48 = vmul.f32 0.00390625, %v1175_v58  ;;  %v1439_v54 = vmul.f32 0.00390625, %v1183_v26  ;;  %v1185_v61 = vmax.f32 %v929_v5, 0.0  ;;  %v920_v59 = vadd.f32 %v2420_v12, %v2783_v37  ;;  %v1806_v26 = vpop.permute.xlu0 %1805 }
 0x16e   : > { %v1560_v17 = vpack.c.bf16 %v1424_v60, %v1416_v22  ;;  %v1433_v0 = vmul.f32 0.00390625, %v1177_v62  ;;  %v1174_v3 = vmax.f32 %v918_v63, 0.0  ;;  %v1182_v13 = vmax.f32 %v926_v11, 0.0 }
 0x16f   : > { %v1567_v4 = vpack.c.bf16 %v1439_v54, %v1431_v48  ;;  %v1441_v29 = vmul.f32 0.00390625, %v1185_v61  ;;  %v928_v7 = vadd.f32 %v2420_v12, %v2781_v36  ;;  %v1176_v2 = vmax.f32 %v920_v59, 0.0 }
 0x170   : > { %1738 = vmatpush1.bf16.msra.mxu1 %v1560_v17  ;;  %v1430_v16 = vmul.f32 0.00390625, %v1174_v3  ;;  %v1438_v10 = vmul.f32 0.00390625, %v1182_v13  ;;  %v3130_v56 = vmov 0  }
 0x171   : > { %1698 = vmatprep.subr.bf16.mxu0 %v1567_v4  ;;  %v1569_v41 = vpack.c.bf16 %v1441_v29, %v1433_v0  ;;  %v1184_v14 = vmax.f32 %v928_v7, 0.0  ;;  %v1432_v28 = vmul.f32 0.00390625, %v1176_v2 }
 0x172   : > { %v1566_v19 = vpack.c.bf16 %v1438_v10, %v1430_v16 }
 0x173   : > { %1739 = vmatprep.subr.bf16.mxu1 %v1569_v41  ;;  %v1440_v37 = vmul.f32 0.00390625, %v1184_v14 }
 0x174   : > { %1699 = vmatpush1.bf16.msra.mxu0 %v1566_v19 }
 0x175   : > { %v1568_v24 = vpack.c.bf16 %v1440_v37, %v1432_v28 }
 0x177   : > { %1740 = vmatpush1.bf16.msra.mxu1 %v1568_v24  ;;  %1701 = vmatmul.mubr.bf16.vlgmr.msra.gmra.mrb[4].mxu0 %v2822_v51 }
 0x178   : > { %1869 = vmatprep.mubr.bf16.mxu0 %v3130_v56 }
 0x17a   : > { %1742 = vmatmul.mubr.bf16.vlgmr.msra.gmra.mrb[4].mxu1 %v2822_v51 }
 0x17b   : > { %1910 = vmatprep.mubr.bf16.mxu1 %v3130_v56 }
 0x1da   : > { %v1620_v12 = vpop.f32.mrb[0].mxu0 }
 0x1db   : > { %v1622_v36 = vpop.f32.mrb[1].mxu0 }
 0x1dc   : > { %v1758_v21 = vcombine.low %v1620_v12, %v1622_v36  ;;  %v2271_v55 = vcombine.low %v1622_v36, %v1622_v36  ;;  %v1624_v50 = vpop.f32.mrb[2].mxu0 }
 0x1dd   : > { %v1661_v25 = vpop.f32.mrb[0].mxu1  ;;  %v1625_v18 = vpop.f32.mrb[3].mxu0 }
 0x1de   : > { %v1794_v9 = vpack.c.bf16 %v1758_v21, %v1758_v21  ;;  %v1795_v20 = vpack.c.bf16 %v2271_v55, %v2271_v55  ;;  %v1663_v40 = vpop.f32.mrb[1].mxu1 }
 0x1df   : > { %v1759_v32 = vcombine.low %v1661_v25, %v1663_v40  ;;  %v2272_v33 = vcombine.low %v1663_v40, %v1663_v40  ;;  %v1665_v34 = vpop.f32.mrb[2].mxu1 }
 0x1e0   : > { %v1666_v15 = vpop.f32.mrb[3].mxu1  ;;  %2258 = vmatprep.subr.msk.bf16.mxu0 %vm1812_vm0, %v1795_v20  ;;  %v1814_v51 = vsel %vm1812_vm0, %v1794_v9, 0 }
 0x1e1   : > { %v1796_v6 = vpack.c.bf16 %v1759_v32, %v1759_v32  ;;  %v1797_v39 = vpack.c.bf16 %v2272_v33, %v2272_v33  ;;  %1838 = vmatpush1.bf16.msra.mxu0 %v1814_v51 }
 0x1e3   : > { %2260 = vmatprep.subr.msk.bf16.mxu1 %vm1812_vm0, %v1797_v39  ;;  %v1820_v35 = vsel %vm1812_vm0, %v1796_v6, 0 }
 0x1e4   : > { %1879 = vmatpush1.bf16.msra.mxu1 %v1820_v35  ;;  %2259 = vmatmul.mubr.msk.bf16.vlgmr.msra.gmra.mrb[8].mxu0 %vm1808_vm1, %v1777_v31 }
 0x1e5   : > { %1951 = vmatprep.mubr.bf16.mxu0 %v3130_v56 }
 0x1e7   : > { %2261 = vmatmul.mubr.msk.bf16.vlgmr.msra.gmra.mrb[8].mxu1 %vm1808_vm1, %v1777_v31 }
 0x1e8   : > { %1992 = vmatprep.mubr.bf16.mxu1 %v3130_v56 }
 0x24a   : > { %v1702_v42 = vpop.f32.mrb[4].mxu0 }
 0x24b   : > { %v1704_v53 = vpop.f32.mrb[5].mxu0 }
 0x24c   : > { %v1760_v43 = vcombine.low %v1702_v42, %v1704_v53  ;;  %v2273_v38 = vcombine.low %v1704_v53, %v1704_v53  ;;  %v1706_v44 = vpop.f32.mrb[6].mxu0 }
 0x24d   : > { %v1743_v30 = vpop.f32.mrb[4].mxu1  ;;  %v1707_v23 = vpop.f32.mrb[7].mxu0 }
 0x24e   : > { %v1798_v45 = vpack.c.bf16 %v1760_v43, %v1760_v43  ;;  %v1799_v52 = vpack.c.bf16 %v2273_v38, %v2273_v38  ;;  %v1745_v46 = vpop.f32.mrb[5].mxu1 }
 0x24f   : > { %v1761_v47 = vcombine.low %v1743_v30, %v1745_v46  ;;  %v2274_v8 = vcombine.low %v1745_v46, %v1745_v46  ;;  %v1747_v27 = vpop.f32.mrb[6].mxu1 }
 0x250   : > { %v1748_v49 = vpop.f32.mrb[7].mxu1  ;;  %2262 = vmatprep.subr.msk.bf16.mxu0 %vm1812_vm0, %v1799_v52  ;;  %v1826_v22 = vsel %vm1812_vm0, %v1798_v45, 0 }
 0x251   : > { %v1800_v57 = vpack.c.bf16 %v1761_v47, %v1761_v47  ;;  %v1801_v1 = vpack.c.bf16 %v2274_v8, %v2274_v8  ;;  %1920 = vmatpush1.bf16.msra.mxu0 %v1826_v22 }
 0x253   : > { %2264 = vmatprep.subr.msk.bf16.mxu1 %vm1812_vm0, %v1801_v1  ;;  %v1832_v58 = vsel %vm1812_vm0, %v1800_v57, 0 }
 0x254   : > { %1961 = vmatpush1.bf16.msra.mxu1 %v1832_v58  ;;  %2263 = vmatmul.mubr.msk.bf16.vlgmr.msra.gmra.mrb[12].mxu0 %vm1808_vm1, %v1777_v31 }
 0x257   : > { %2265 = vmatmul.mubr.msk.bf16.vlgmr.msra.gmra.mrb[12].mxu1 %vm1808_vm1, %v1777_v31 }
 0x2b7   : > { %v1871_v5 = vpop.f32.mrb[8].mxu0 }
 0x2b8   : > { %v1872_v60 = vadd.f32 %v1871_v5, %v1806_v26  ;;  %v1873_v62 = vpop.f32.mrb[9].mxu0 }
 0x2b9   : > { %v1874_v63 = vadd.f32 %v1873_v62, %v1806_v26  ;;  %v1875_v11 = vpop.f32.mrb[10].mxu0 }
 0x2ba   : > { %2001 = vst [vmem:[%s3093_s28] sm:$0xff] %v1872_v60  ;;  %v2020_v48 = vmul.f32 %v1872_v60, %v1872_v60  ;;  %v1912_v54 = vpop.f32.mrb[8].mxu1  ;;  %v1876_v61 = vpop.f32.mrb[11].mxu0 }
 0x2bb   : > { %v1913_v59 = vadd.f32 %v1912_v54, %v1806_v26  ;;  %2002 = vst [vmem:[%s3093_s28 + $0x8] sm:$0xff] %v1874_v63  ;;  %v2009_v17 = vadd.f32 %v1874_v63, %v1872_v60  ;;  %v2021_v0 = vmul.f32 %v1874_v63, %v1874_v63  ;;  %v1914_v3 = vpop.f32.mrb[9].mxu1 }
 0x2bc   : > { %v1915_v13 = vadd.f32 %v1914_v3, %v1806_v26  ;;  %v1916_v4 = vpop.f32.mrb[10].mxu1 }
 0x2bd   : > { %2003 = vst [vmem:[%s3093_s28 + $0x10] sm:$0xff] %v1913_v59  ;;  %v2022_v29 = vmul.f32 %v1913_v59, %v1913_v59  ;;  %v2028_v7 = vadd.f32 %v2021_v0, %v2020_v48  ;;  %v2010_v2 = vadd.f32 %v2009_v17, %v1913_v59  ;;  %v1917_v16 = vpop.f32.mrb[11].mxu1 }
 0x2be   : > { %2004 = vst [vmem:[%s3093_s28 + $0x18] sm:$0xff] %v1915_v13  ;;  %v2023_v41 = vmul.f32 %v1915_v13, %v1915_v13 }
 0x2bf   : > { %v2011_v10 = vadd.f32 %v2010_v2, %v1915_v13  ;;  %v2029_v14 = vadd.f32 %v2028_v7, %v2022_v29 }
 0x2c1   : > { %v2030_v28 = vadd.f32 %v2029_v14, %v2023_v41 }
 0x327   : > { %v1953_v19 = vpop.f32.mrb[12].mxu0 }
 0x328   : > { %v1954_v37 = vadd.f32 %v1953_v19, %v1806_v26  ;;  %v1955_v24 = vpop.f32.mrb[13].mxu0 }
 0x329   : > { %v1956_v56 = vadd.f32 %v1955_v24, %v1806_v26  ;;  %v1957_v12 = vpop.f32.mrb[14].mxu0 }
 0x32a   : > { %2005 = vst [vmem:[%s3093_s28 + $0x20] sm:$0xff] %v1954_v37  ;;  %v2012_v36 = vadd.f32 %v2011_v10, %v1954_v37  ;;  %v2024_v21 = vmul.f32 %v1954_v37, %v1954_v37  ;;  %v1994_v55 = vpop.f32.mrb[12].mxu1  ;;  %v1958_v50 = vpop.f32.mrb[15].mxu0 }
 0x32b   : > { %v1995_v25 = vadd.f32 %v1994_v55, %v1806_v26  ;;  %2006 = vst [vmem:[%s3093_s28 + $0x28] sm:$0xff] %v1956_v56  ;;  %v2025_v18 = vmul.f32 %v1956_v56, %v1956_v56  ;;  %v1996_v9 = vpop.f32.mrb[13].mxu1 }
 0x32c   : > { %v2031_v20 = vadd.f32 %v2030_v28, %v2024_v21  ;;  %v2013_v40 = vadd.f32 %v2012_v36, %v1956_v56  ;;  %v1997_v32 = vadd.f32 %v1996_v9, %v1806_v26  ;;  %v1998_v33 = vpop.f32.mrb[14].mxu1 }
 0x32d   : > { %2007 = vst [vmem:[%s3093_s28 + $0x30] sm:$0xff] %v1995_v25  ;;  %v1999_v34 = vpop.f32.mrb[15].mxu1  ;;  %v2026_v15 = vmul.f32 %v1995_v25, %v1995_v25 }
 0x32e   : > { %2008 = vst [vmem:[%s3093_s28 + $0x38] sm:$0xff] %v1997_v32  ;;  %v2014_v51 = vadd.f32 %v2013_v40, %v1995_v25  ;;  %v2032_v6 = vadd.f32 %v2031_v20, %v2025_v18  ;;  %v2027_v31 = vmul.f32 %v1997_v32, %v1997_v32 }
 0x330   : > { %v2015_v39 = vadd.f32 %v2014_v51, %v1997_v32  ;;  %v2033_v35 = vadd.f32 %v2032_v6, %v2026_v15 }
 0x332   : > { %2016 = vadd.xlane.f32.xlu1 %v2015_v39  ;;  %v2034_v42 = vadd.f32 %v2033_v35, %v2027_v31 }
 0x334   : > { %2035 = vadd.xlane.f32.xlu0 %v2034_v42 }
 0x3bf   : > { %v2017_v53 = vpop.xlane.xlu1 %2016 }
 0x3c0   : > { %2019 = vst.msk [vmem:[%s423_s8] sm:$0xff] %vm2018_vm2, %v2017_v53 }
 0x3c1   : > { %v2036_v43 = vpop.xlane.xlu0 %2035 }
 0x3c2   : > { %2037 = vst.msk [vmem:[%s430_s11] sm:$0xff] %vm2018_vm2, %v2036_v43 }
 0x3c3 PF: > { %s18_s26 = sadd.s32 1, %s2325_s26   ;;  %s3131_s24 = smov %s2321_s25 }
 0x3c4   : > { %p15_p5 = scmp.ge.s32.totalorder %s18_s26, 4   ;;  %s3132_s25 = smov %s3134_s27 }
 0x3c6   :  { %17 = sbr.rel (!%p15_p5) target bundleno = 2 (0x2), region = 108 }

</bundles_post_ra>
